<compile_context>
chip_gen: v7x
topology: tpu7x:2x2x1
jax: 0.10.0
libtpu: 0.0.40
codegen_flags: <defaults>
</compile_context>

<pallas_src>
import functools
import numpy as np

import jax
import jax.numpy as jnp
from jax.experimental import pallas as pl
from jax.experimental.pallas import tpu as pltpu


# ---------------------------------------------------------------------------
# helpers (usable both inside the kernel and in the pure-JAX reference)
# ---------------------------------------------------------------------------
def _layernorm(x, w, b, eps=1e-5):
    mu = jnp.mean(x, axis=-1, keepdims=True)
    xc = x - mu
    var = jnp.mean(xc * xc, axis=-1, keepdims=True)
    return xc * jax.lax.rsqrt(var + eps) * w + b


def _round_up(n, m):
    return -(-n // m) * m


def _default_vmem_limit():
    """Per-generation scoped VMEM limit (None -> compiler default)."""
    try:
        kind = jax.devices()[0].device_kind.lower()
    except Exception:
        return None
    if "7" in kind:                      # v7x: 64 MiB physical per TC
        return 44 * 1024 * 1024
    if "v5" in kind or "v6" in kind:     # v5e/v5p/v6e: 128 MiB physical
        return 96 * 1024 * 1024
    return None


# ---------------------------------------------------------------------------
# Pallas kernel: one grid step = (one batch block, one encoder layer)
# ---------------------------------------------------------------------------
def transformer_cls_kernel(
    # inputs -----------------------------------------------------------------
    x_ref,            # (bb*S_pad, Din) row-stacked input; cls/pad rows are 0
    emb_w_ref,        # (Din, E)   pre-transposed embedding weight
    badd_ref,         # (S_pad, E) fused cls/pos-enc/embedding-bias add table
    in_w_ref,         # (E, 3E)    current layer (leading L dim squeezed)
    in_b_ref,         # (1, 3E)
    out_w_ref,        # (E, E)
    out_b_ref,        # (1, E)
    ln1_w_ref, ln1_b_ref,   # (1, E)
    ln2_w_ref, ln2_b_ref,   # (1, E)
    ffn_w1_ref,       # (E, F)
    ffn_b1_ref,       # (1, F)
    ffn_w2_ref,       # (F, E)
    ffn_b2_ref,       # (1, E)
    fc_w_ref,         # (E, 1)
    fc_b_ref,         # (1, 1)
    # outputs ----------------------------------------------------------------
    logits_ref,       # (bb, 1)
    # scratch ----------------------------------------------------------------
    h_ref,            # VMEM (bb*S_pad, E) f32 -- persistent hidden state
    *,
    num_heads: int,
    seq_len: int,         # S = T + 1 (valid rows per sequence)
    seq_pad: int,         # S_pad = round_up(S, 8)
    batch_block: int,     # bb
    mxu_dtype,
    approx_recip: bool,
):
    layer = pl.program_id(1)
    last_layer = pl.num_programs(1) - 1

    bb = batch_block
    S = seq_len
    Sp = seq_pad
    M = bb * Sp
    E = out_w_ref.shape[0]
    hd = E // num_heads
    scale = 1.0 / float(np.sqrt(hd))

    def _c(a):
        return a if a.dtype == mxu_dtype else a.astype(mxu_dtype)

    def mm(a, w):
        # plain a @ w, contraction on rhs dim 0; f32 accumulation on the MXU.
        return jnp.dot(_c(a), _c(w), preferred_element_type=jnp.float32)

    # ---- layer 0 of this batch block: embedding in one matmul ---------------
    @pl.when(layer == 0)
    def _embed():
        eb = mm(x_ref[...], emb_w_ref[...])                     # (M, E)
        eb = eb.reshape(bb, Sp, E) + badd_ref[...]              # + cls/pe/bias
        h_ref[...] = eb.reshape(M, E)                           # pad rows = 0

    # ---- one post-norm encoder layer (MHSA + ReLU FFN) on the whole block ---
    h = h_ref[...]                                              # (M, E)
    qkv = mm(h, in_w_ref[...]) + in_b_ref[...]                  # (M, 3E)
    qkv3 = qkv.reshape(bb, Sp, 3 * E)

    if Sp > S:
        col = jax.lax.broadcasted_iota(jnp.int32, (1, Sp), 1)
        neg_bias = jnp.where(col < S, 0.0, -1e30)               # mask pad keys
    else:
        neg_bias = 0.0

    ow = out_w_ref[...]                                         # (E, E)
    attn = jnp.zeros((M, E), jnp.float32)
    for hh in range(num_heads):        # static loop, fused output projection
        lo = hh * hd
        q = qkv3[:, :, lo:lo + hd]
        k = qkv3[:, :, E + lo:E + lo + hd]
        v = qkv3[:, :, 2 * E + lo:2 * E + lo + hd]
        s = jnp.einsum('bqd,bkd->bqk', _c(q), _c(k),
                       preferred_element_type=jnp.float32) * scale
        s = s + neg_bias
        s = s - jnp.max(s, axis=-1, keepdims=True)
        p = jnp.exp(s)
        denom = jnp.sum(p, axis=-1, keepdims=True)
        if approx_recip:
            p = p * pl.reciprocal(denom, approx=True)
        else:
            p = p / denom
        ctx = jnp.einsum('bqk,bkd->bqd', _c(p), _c(v),
                         preferred_element_type=jnp.float32)    # (bb, Sp, hd)
        attn = attn + mm(ctx.reshape(M, hd), ow[lo:lo + hd, :]) # (M, E)
    attn = attn + out_b_ref[...]

    h1 = _layernorm(h + attn, ln1_w_ref[...], ln1_b_ref[...])
    ff = jnp.maximum(mm(h1, ffn_w1_ref[...]) + ffn_b1_ref[...], 0.0)
    ff = mm(ff, ffn_w2_ref[...]) + ffn_b2_ref[...]
    h2 = _layernorm(h1 + ff, ln2_w_ref[...], ln2_b_ref[...])
    h_ref[...] = h2

    # ---- last layer: classification head on the cls rows --------------------
    @pl.when(layer == last_layer)
    def _head():
        cls_out = h2.reshape(bb, Sp, E)[:, 0, :]                # (bb, E)
        logits_ref[...] = mm(cls_out, fc_w_ref[...]) + fc_b_ref[...]   # (bb, 1)


# ---------------------------------------------------------------------------
# wrapper
# ---------------------------------------------------------------------------
def transformer_forward(x, params, *, num_heads, num_layers, batch_block=None,
                        mxu_dtype=jnp.float32, weight_dtype=None,
                        approx_recip=False, vmem_limit_bytes=None):
    B, T, Din = x.shape
    E = params["cls"].shape[1]
    F = params["ffn_w1"].shape[1]
    S = T + 1
    Sp = _round_up(S, 8)                         # sublane-aligned seq length

    bb = B if batch_block is None else batch_block   # on v7x prefer bb = B//2
    assert B % bb == 0, "batch_block must divide batch size"
    nb = B // bb
    if bb != B:
        assert bb % 8 == 0, "batch_block < B requires batch_block % 8 == 0"

    wdt = jnp.float32 if weight_dtype is None else weight_dtype

    # pre-transposed weights (contraction on rhs dim 0); optionally bf16 in HBM
    emb_w_t = params["emb_w"].T.astype(wdt)                     # (Din, E)
    in_w_t = params["in_w"].transpose(0, 2, 1).astype(wdt)      # (L, E, 3E)
    out_w_t = params["out_w"].transpose(0, 2, 1).astype(wdt)    # (L, E, E)
    ffn_w1_t = params["ffn_w1"].transpose(0, 2, 1).astype(wdt)  # (L, E, F)
    ffn_w2_t = params["ffn_w2"].transpose(0, 2, 1).astype(wdt)  # (L, F, E)
    fc_w_t = params["fc_w"].T.astype(jnp.float32)               # (E, 1)

    # fused additive table: row 0 = cls + pe[0]; rows 1..T = emb_b + pe[r];
    # pad rows stay 0.
    pe = params["pe"]
    badd = jnp.zeros((Sp, E), jnp.float32)
    badd = badd.at[0, :].set(params["cls"][0] + pe[0])
    badd = badd.at[1:S, :].set(params["emb_b"][0] + pe[1:S])

    # row-stacked input with zero rows in the cls / pad slots (layout plumbing)
    x_pad = jnp.zeros((B, Sp, Din), x.dtype).at[:, 1:S, :].set(x)
    x_pad = x_pad.reshape(B * Sp, Din)

    def to3(p):                      # (L, d) -> (L, 1, d): kernel biases stay 2-D
        return p[:, None, :]

    inputs = [
        x_pad, emb_w_t, badd,
        in_w_t, to3(params["in_b"]),
        out_w_t, to3(params["out_b"]),
        to3(params["ln1_w"]), to3(params["ln1_b"]),
        to3(params["ln2_w"]), to3(params["ln2_b"]),
        ffn_w1_t, to3(params["ffn_b1"]),
        ffn_w2_t, to3(params["ffn_b2"]),
        fc_w_t, params["fc_b"],
    ]

    def const2(shape):
        return pl.BlockSpec(shape, lambda b, l: (0, 0))

    def perlayer(shape):
        return pl.BlockSpec((None,) + shape, lambda b, l: (l, 0, 0))

    in_specs = [
        pl.BlockSpec((bb * Sp, Din), lambda b, l: (b, 0)),   # x (row-stacked)
        const2((Din, E)),                                    # emb_w_t
        const2((Sp, E)),                                     # badd
        perlayer((E, 3 * E)),                                # in_w_t
        perlayer((1, 3 * E)),                                # in_b
        perlayer((E, E)),                                    # out_w_t
        perlayer((1, E)),                                    # out_b
        perlayer((1, E)), perlayer((1, E)),                  # ln1_w, ln1_b
        perlayer((1, E)), perlayer((1, E)),                  # ln2_w, ln2_b
        perlayer((E, F)),                                    # ffn_w1_t
        perlayer((1, F)),                                    # ffn_b1
        perlayer((F, E)),                                    # ffn_w2_t
        perlayer((1, E)),                                    # ffn_b2
        const2((E, 1)),                                      # fc_w_t
        const2((1, 1)),                                      # fc_b
    ]

    if vmem_limit_bytes is None:
        vmem_limit_bytes = _default_vmem_limit()
    cp_kwargs = dict(dimension_semantics=("parallel", "arbitrary"))
    if vmem_limit_bytes is not None:
        cp_kwargs["vmem_limit_bytes"] = vmem_limit_bytes

    kernel = functools.partial(
        transformer_cls_kernel,
        num_heads=num_heads, seq_len=S, seq_pad=Sp, batch_block=bb,
        mxu_dtype=mxu_dtype, approx_recip=approx_recip)

    logits = pl.pallas_call(
        kernel,
        out_shape=jax.ShapeDtypeStruct((B, 1), jnp.float32),
        grid_spec=pltpu.PrefetchScalarGridSpec(
            num_scalar_prefetch=0,
            grid=(nb, num_layers),
            in_specs=in_specs,
            out_specs=pl.BlockSpec((bb, 1), lambda b, l: (b, 0)),
            scratch_shapes=[pltpu.VMEM((bb * Sp, E), jnp.float32)]),
        compiler_params=pltpu.CompilerParams(**cp_kwargs),
    )(*inputs)
    return logits[:, 0]   # matches logits.squeeze(1) -> (B,)


# ---------------------------------------------------------------------------
# parameter init (deterministic, mirrors the nn.Module __init__ shapes)
# ---------------------------------------------------------------------------
def init_params(key, *, input_dim, embed_dim, num_layers, dim_feedforward,
                seq_len_plus_one):
    E, F, L, S = embed_dim, dim_feedforward, num_layers, seq_len_plus_one
    ks = jax.random.split(key, 12)
    s = 0.1
    p = {}
    p["emb_w"] = s * jax.random.normal(ks[0], (E, input_dim), jnp.float32)
    p["emb_b"] = s * jax.random.normal(ks[1], (1, E), jnp.float32)
    p["cls"] = jnp.zeros((1, E), jnp.float32)   # nn.Parameter(torch.zeros(1,1,E))

    # sinusoidal positional encoding, exactly as PositionalEncoding.__init__
    pos = np.arange(S, dtype=np.float32)[:, None]
    div = np.exp(np.arange(0, E, 2, dtype=np.float32) * (-np.log(10000.0) / E))
    pe = np.zeros((S, E), np.float32)
    pe[:, 0::2] = np.sin(pos * div)
    pe[:, 1::2] = np.cos(pos * div)
    p["pe"] = jnp.asarray(pe)

    p["in_w"] = s * jax.random.normal(ks[2], (L, 3 * E, E), jnp.float32)
    p["in_b"] = s * jax.random.normal(ks[3], (L, 3 * E), jnp.float32)
    p["out_w"] = s * jax.random.normal(ks[4], (L, E, E), jnp.float32)
    p["out_b"] = s * jax.random.normal(ks[5], (L, E), jnp.float32)
    p["ln1_w"] = jnp.ones((L, E), jnp.float32)
    p["ln1_b"] = jnp.zeros((L, E), jnp.float32)
    p["ln2_w"] = jnp.ones((L, E), jnp.float32)
    p["ln2_b"] = jnp.zeros((L, E), jnp.float32)
    p["ffn_w1"] = s * jax.random.normal(ks[6], (L, F, E), jnp.float32)
    p["ffn_b1"] = s * jax.random.normal(ks[7], (L, F), jnp.float32)
    p["ffn_w2"] = s * jax.random.normal(ks[8], (L, E, F), jnp.float32)
    p["ffn_b2"] = s * jax.random.normal(ks[9], (L, E), jnp.float32)
    p["fc_w"] = s * jax.random.normal(ks[10], (1, E), jnp.float32)
    p["fc_b"] = s * jax.random.normal(ks[11], (1, 1), jnp.float32)
    return p


# ---------------------------------------------------------------------------
# pure-JAX reference (same math, vectorized) for correctness checking
# ---------------------------------------------------------------------------
def reference_forward(x, p, *, num_heads, num_layers):
    B, T, _ = x.shape
    E = p["cls"].shape[1]
    hd = E // num_heads
    scale = 1.0 / np.sqrt(hd)

    h = jnp.einsum("btd,ed->bte", x, p["emb_w"]) + p["emb_b"][0]
    cls = jnp.broadcast_to(p["cls"][None], (B, 1, E))
    h = jnp.concatenate([cls, h], axis=1) + p["pe"][None]

    for l in range(num_layers):
        qkv = jnp.einsum("bse,fe->bsf", h, p["in_w"][l]) + p["in_b"][l]
        q, k, v = qkv[..., :E], qkv[..., E:2 * E], qkv[..., 2 * E:]
        q = q.reshape(B, -1, num_heads, hd)
        k = k.reshape(B, -1, num_heads, hd)
        v = v.reshape(B, -1, num_heads, hd)
        s = jnp.einsum("bqhd,bkhd->bhqk", q, k) * scale
        a = jax.nn.softmax(s, axis=-1)
        ctx = jnp.einsum("bhqk,bkhd->bqhd", a, v).reshape(B, -1, E)
        attn = jnp.einsum("bse,fe->bsf", ctx, p["out_w"][l]) + p["out_b"][l]
        h = _layernorm(h + attn, p["ln1_w"][l], p["ln1_b"][l])
        ff = jax.nn.relu(jnp.einsum("bse,fe->bsf", h, p["ffn_w1"][l]) + p["ffn_b1"][l])
        ff = jnp.einsum("bsf,ef->bse", ff, p["ffn_w2"][l]) + p["ffn_b2"][l]
        h = _layernorm(h + ff, p["ln2_w"][l], p["ln2_b"][l])

    cls_out = h[:, 0]
    return (cls_out @ p["fc_w"].T + p["fc_b"])[:, 0]


# ---------------------------------------------------------------------------
if __name__ == "__main__":
    # small shapes consistent with the module: (batch, num_tiles, input_dim)
    B, T, INPUT_DIM = 2, 8, 16
    EMBED_DIM, NUM_HEADS, NUM_LAYERS, DIM_FF = 32, 4, 3, 64
    S = T + 1   # sequence length after prepending the cls token

    key = jax.random.PRNGKey(0)
    kx, kp = jax.random.split(key)
    x = jax.random.normal(kx, (B, T, INPUT_DIM), jnp.float32)

    params = init_params(
        kp,
        input_dim=INPUT_DIM,
        embed_dim=EMBED_DIM,
        num_layers=NUM_LAYERS,
        dim_feedforward=DIM_FF,
        seq_len_plus_one=S,
    )

    ref = reference_forward(x, params, num_heads=NUM_HEADS, num_layers=NUM_LAYERS)

    # f32 MXU operands: matches the PyTorch-equivalent reference.
    logits = transformer_forward(x, params, num_heads=NUM_HEADS,
                                 num_layers=NUM_LAYERS)
    logits = jax.block_until_ready(logits)
    np.testing.assert_allclose(np.asarray(logits), np.asarray(ref),
                               rtol=1e-4, atol=1e-4)

    # bf16 weights in HBM + bf16 MXU operands + EUP approx reciprocal
    # (recommended on v6e/v7x); f32 accumulation keeps results close.
    logits_bf16 = transformer_forward(x, params, num_heads=NUM_HEADS,
                                      num_layers=NUM_LAYERS,
                                      mxu_dtype=jnp.bfloat16,
                                      weight_dtype=jnp.bfloat16,
                                      approx_recip=True)
    logits_bf16 = jax.block_until_ready(logits_bf16)
    assert np.all(np.isfinite(np.asarray(logits_bf16)))
    np.testing.assert_allclose(np.asarray(logits_bf16), np.asarray(ref),
                               rtol=1e-1, atol=1e-1)

    print("KERNEL_OK")
</pallas_src>

<mosaic_0001>
module attributes {stable_mosaic.version = 11 : i64} {
  func.func @transformer_cls_kernel(%arg0: i32, %arg1: i32, %arg2: memref<32x16xf32, #tpu.memory_space<vmem>>, %arg3: memref<16x32xf32, #tpu.memory_space<vmem>>, %arg4: memref<16x32xf32, #tpu.memory_space<vmem>>, %arg5: memref<1x32x96xf32, #tpu.memory_space<vmem>>, %arg6: memref<1x1x96xf32, #tpu.memory_space<vmem>>, %arg7: memref<1x32x32xf32, #tpu.memory_space<vmem>>, %arg8: memref<1x1x32xf32, #tpu.memory_space<vmem>>, %arg9: memref<1x1x32xf32, #tpu.memory_space<vmem>>, %arg10: memref<1x1x32xf32, #tpu.memory_space<vmem>>, %arg11: memref<1x1x32xf32, #tpu.memory_space<vmem>>, %arg12: memref<1x1x32xf32, #tpu.memory_space<vmem>>, %arg13: memref<1x32x64xf32, #tpu.memory_space<vmem>>, %arg14: memref<1x1x64xf32, #tpu.memory_space<vmem>>, %arg15: memref<1x64x32xf32, #tpu.memory_space<vmem>>, %arg16: memref<1x1x32xf32, #tpu.memory_space<vmem>>, %arg17: memref<32x1xf32, #tpu.memory_space<vmem>>, %arg18: memref<1x1xf32, #tpu.memory_space<vmem>>, %arg19: memref<2x1xf32, #tpu.memory_space<vmem>>, %arg20: memref<32x32xf32, #tpu.memory_space<vmem>>) attributes {dimension_semantics = [#tpu.dimension_semantics<parallel>, #tpu.dimension_semantics<arbitrary>], iteration_bounds = array<i64: 1, 3>, scalar_prefetch = 0 : i64, scratch_operands = 1 : i64, tpu.core_type = #tpu.core_type<tc>, window_params = [{transform_indices = @transform_0, window_bounds = array<i64: 32, 16>}, {pipeline_mode = #tpu.pipeline_mode<synchronous>, transform_indices = @transform_1, window_bounds = array<i64: 16, 32>}, {pipeline_mode = #tpu.pipeline_mode<synchronous>, transform_indices = @transform_2, window_bounds = array<i64: 16, 32>}, {transform_indices = @transform_3, window_bounds = array<i64: 1, 32, 96>}, {transform_indices = @transform_4, window_bounds = array<i64: 1, 1, 96>}, {transform_indices = @transform_5, window_bounds = array<i64: 1, 32, 32>}, {transform_indices = @transform_6, window_bounds = array<i64: 1, 1, 32>}, {transform_indices = @transform_7, window_bounds = array<i64: 1, 1, 32>}, {transform_indices = @transform_8, window_bounds = array<i64: 1, 1, 32>}, {transform_indices = @transform_9, window_bounds = array<i64: 1, 1, 32>}, {transform_indices = @transform_10, window_bounds = array<i64: 1, 1, 32>}, {transform_indices = @transform_11, window_bounds = array<i64: 1, 32, 64>}, {transform_indices = @transform_12, window_bounds = array<i64: 1, 1, 64>}, {transform_indices = @transform_13, window_bounds = array<i64: 1, 64, 32>}, {transform_indices = @transform_14, window_bounds = array<i64: 1, 1, 32>}, {pipeline_mode = #tpu.pipeline_mode<synchronous>, transform_indices = @transform_15, window_bounds = array<i64: 32, 1>}, {pipeline_mode = #tpu.pipeline_mode<synchronous>, transform_indices = @transform_16, window_bounds = array<i64: 1, 1>}, {transform_indices = @transform_17, window_bounds = array<i64: 2, 1>}]} {
    %c0_i32 = arith.constant 0 : i32
    %0 = arith.cmpi eq, %arg1, %c0_i32 : i32
    %1 = arith.extui %0 : i1 to i32
    %c0_i32_0 = arith.constant 0 : i32
    %2 = arith.cmpi ne, %1, %c0_i32_0 : i32
    scf.if %2 {
      %c0_81 = arith.constant 0 : index
      %c0_82 = arith.constant 0 : index
      %187 = vector.load %arg2[%c0_81, %c0_82] : memref<32x16xf32, #tpu.memory_space<vmem>>, vector<32x16xf32>
      %c0_83 = arith.constant 0 : index
      %c0_84 = arith.constant 0 : index
      %188 = vector.load %arg3[%c0_83, %c0_84] : memref<16x32xf32, #tpu.memory_space<vmem>>, vector<16x32xf32>
      %cst_85 = arith.constant dense<0.000000e+00> : vector<32x32xf32>
      %189 = tpu.matmul %187, %188, %cst_85 {dimension_numbers = #tpu.dot_dimension_numbers<[1], [0], [0], [1], [0, 0, 1, 1], [], []>} : vector<32x16xf32>, vector<16x32xf32>, vector<32x32xf32> -> vector<32x32xf32>
      %190 = vector.shape_cast %189 : vector<32x32xf32> to vector<2x16x32xf32>
      %c0_86 = arith.constant 0 : index
      %c0_87 = arith.constant 0 : index
      %191 = vector.load %arg4[%c0_86, %c0_87] : memref<16x32xf32, #tpu.memory_space<vmem>>, vector<16x32xf32>
      %192 = vector.shape_cast %191 : vector<16x32xf32> to vector<1x16x32xf32>
      %193 = vector.broadcast %192 : vector<1x16x32xf32> to vector<2x16x32xf32>
      %194 = arith.addf %190, %193 : vector<2x16x32xf32>
      %195 = vector.shape_cast %194 : vector<2x16x32xf32> to vector<32x32xf32>
      %c0_88 = arith.constant 0 : index
      %c0_89 = arith.constant 0 : index
      %196 = vector.load %arg20[%c0_88, %c0_89] : memref<32x32xf32, #tpu.memory_space<vmem>>, vector<32x32xf32>
      tpu.vector_store %arg20[%c0_88, %c0_89], %195 {strides = array<i32>} : memref<32x32xf32, #tpu.memory_space<vmem>>, vector<32x32xf32>,
    } else {
    }
    %c0 = arith.constant 0 : index
    %c0_1 = arith.constant 0 : index
    %3 = vector.load %arg20[%c0, %c0_1] : memref<32x32xf32, #tpu.memory_space<vmem>>, vector<32x32xf32>
    %c0_2 = arith.constant 0 : index
    %c0_3 = arith.constant 0 : index
    %c0_4 = arith.constant 0 : index
    %4 = vector.load %arg5[%c0_2, %c0_3, %c0_4] : memref<1x32x96xf32, #tpu.memory_space<vmem>>, vector<1x32x96xf32>
    %5 = vector.shape_cast %4 : vector<1x32x96xf32> to vector<32x96xf32>
    %cst = arith.constant dense<0.000000e+00> : vector<32x96xf32>
    %6 = tpu.matmul %3, %5, %cst {dimension_numbers = #tpu.dot_dimension_numbers<[1], [0], [0], [1], [0, 0, 1, 1], [], []>} : vector<32x32xf32>, vector<32x96xf32>, vector<32x96xf32> -> vector<32x96xf32>
    %c0_5 = arith.constant 0 : index
    %c0_6 = arith.constant 0 : index
    %c0_7 = arith.constant 0 : index
    %7 = vector.load %arg6[%c0_5, %c0_6, %c0_7] : memref<1x1x96xf32, #tpu.memory_space<vmem>>, vector<1x1x96xf32>
    %8 = vector.shape_cast %7 : vector<1x1x96xf32> to vector<1x96xf32>
    %9 = vector.broadcast %8 : vector<1x96xf32> to vector<32x96xf32>
    %10 = arith.addf %6, %9 : vector<32x96xf32>
    %11 = vector.shape_cast %10 : vector<32x96xf32> to vector<2x16x96xf32>
    %12 = tpu.iota {dimensions = array<i32: 1>} : vector<1x16xi32>
    %c9_i32 = arith.constant 9 : i32
    %13 = vector.broadcast %c9_i32 : i32 to vector<1x16xi32>
    %14 = arith.cmpi slt, %12, %13 : vector<1x16xi32>
    %cst_8 = arith.constant 0.000000e+00 : f32
    %cst_9 = arith.constant -1.000000e+30 : f32
    %15 = vector.broadcast %cst_8 : f32 to vector<1x16xf32>
    %16 = vector.broadcast %cst_9 : f32 to vector<1x16xf32>
    %17 = arith.select %14, %15, %16 : vector<1x16xi1>, vector<1x16xf32>
    %c0_10 = arith.constant 0 : index
    %c0_11 = arith.constant 0 : index
    %c0_12 = arith.constant 0 : index
    %18 = vector.load %arg7[%c0_10, %c0_11, %c0_12] : memref<1x32x32xf32, #tpu.memory_space<vmem>>, vector<1x32x32xf32>
    %19 = vector.shape_cast %18 : vector<1x32x32xf32> to vector<32x32xf32>
    %cst_13 = arith.constant 0.000000e+00 : f32
    %20 = vector.broadcast %cst_13 : f32 to vector<32x32xf32>
    %21 = vector.extract_strided_slice %11 {offsets = [0, 0, 0], sizes = [2, 16, 8], strides = [1, 1, 1]} : vector<2x16x96xf32> to vector<2x16x8xf32>
    %22 = vector.extract_strided_slice %11 {offsets = [0, 0, 32], sizes = [2, 16, 8], strides = [1, 1, 1]} : vector<2x16x96xf32> to vector<2x16x8xf32>
    %23 = vector.extract_strided_slice %11 {offsets = [0, 0, 64], sizes = [2, 16, 8], strides = [1, 1, 1]} : vector<2x16x96xf32> to vector<2x16x8xf32>
    "tpu.trace_start"() <{level = 10 : i32, message = "bqd,bkd->bqk"}> : () -> ()
    %cst_14 = arith.constant dense<0.000000e+00> : vector<2x16x16xf32>
    %24 = tpu.matmul %21, %22, %cst_14 {dimension_numbers = #tpu.dot_dimension_numbers<[2], [2], [1], [1], [0, 0, 0, 1, 1, 1], [0], [0]>} : vector<2x16x8xf32>, vector<2x16x8xf32>, vector<2x16x16xf32> -> vector<2x16x16xf32>
    "tpu.trace_stop"() : () -> ()
    %cst_15 = arith.constant 0.353553385 : f32
    %25 = vector.broadcast %cst_15 : f32 to vector<2x16x16xf32>
    %26 = arith.mulf %24, %25 : vector<2x16x16xf32>
    %27 = vector.shape_cast %17 : vector<1x16xf32> to vector<1x1x16xf32>
    %28 = vector.broadcast %27 : vector<1x1x16xf32> to vector<2x16x16xf32>
    %29 = arith.addf %26, %28 : vector<2x16x16xf32>
    %cst_16 = arith.constant dense<0xFF800000> : vector<2x16xf32>
    %30 = vector.multi_reduction <maximumf>, %29, %cst_16 [2] : vector<2x16x16xf32> to vector<2x16xf32>
    %31 = vector.shape_cast %30 : vector<2x16xf32> to vector<2x16x1xf32>
    %32 = vector.broadcast %31 : vector<2x16x1xf32> to vector<2x16x16xf32>
    %33 = arith.subf %29, %32 : vector<2x16x16xf32>
    %34 = math.exp %33 : vector<2x16x16xf32>
    %cst_17 = arith.constant dense<0.000000e+00> : vector<2x16xf32>
    %35 = vector.multi_reduction <add>, %34, %cst_17 [2] : vector<2x16x16xf32> to vector<2x16xf32>
    %36 = vector.shape_cast %35 : vector<2x16xf32> to vector<2x16x1xf32>
    %37 = vector.broadcast %36 : vector<2x16x1xf32> to vector<2x16x16xf32>
    %38 = arith.divf %34, %37 : vector<2x16x16xf32>
    "tpu.trace_start"() <{level = 10 : i32, message = "bqk,bkd->bqd"}> : () -> ()
    %cst_18 = arith.constant dense<0.000000e+00> : vector<2x16x8xf32>
    %39 = tpu.matmul %38, %23, %cst_18 {dimension_numbers = #tpu.dot_dimension_numbers<[2], [1], [1], [2], [0, 0, 0, 1, 1, 2], [0], [0]>} : vector<2x16x16xf32>, vector<2x16x8xf32>, vector<2x16x8xf32> -> vector<2x16x8xf32>
    "tpu.trace_stop"() : () -> ()
    %40 = vector.shape_cast %39 : vector<2x16x8xf32> to vector<32x8xf32>
    %41 = vector.extract_strided_slice %19 {offsets = [0, 0], sizes = [8, 32], strides = [1, 1]} : vector<32x32xf32> to vector<8x32xf32>
    %cst_19 = arith.constant dense<0.000000e+00> : vector<32x32xf32>
    %42 = tpu.matmul %40, %41, %cst_19 {dimension_numbers = #tpu.dot_dimension_numbers<[1], [0], [0], [1], [0, 0, 1, 1], [], []>} : vector<32x8xf32>, vector<8x32xf32>, vector<32x32xf32> -> vector<32x32xf32>
    %43 = arith.addf %20, %42 : vector<32x32xf32>
    %44 = vector.extract_strided_slice %11 {offsets = [0, 0, 8], sizes = [2, 16, 8], strides = [1, 1, 1]} : vector<2x16x96xf32> to vector<2x16x8xf32>
    %45 = vector.extract_strided_slice %11 {offsets = [0, 0, 40], sizes = [2, 16, 8], strides = [1, 1, 1]} : vector<2x16x96xf32> to vector<2x16x8xf32>
    %46 = vector.extract_strided_slice %11 {offsets = [0, 0, 72], sizes = [2, 16, 8], strides = [1, 1, 1]} : vector<2x16x96xf32> to vector<2x16x8xf32>
    "tpu.trace_start"() <{level = 10 : i32, message = "bqd,bkd->bqk"}> : () -> ()
    %cst_20 = arith.constant dense<0.000000e+00> : vector<2x16x16xf32>
    %47 = tpu.matmul %44, %45, %cst_20 {dimension_numbers = #tpu.dot_dimension_numbers<[2], [2], [1], [1], [0, 0, 0, 1, 1, 1], [0], [0]>} : vector<2x16x8xf32>, vector<2x16x8xf32>, vector<2x16x16xf32> -> vector<2x16x16xf32>
    "tpu.trace_stop"() : () -> ()
    %cst_21 = arith.constant 0.353553385 : f32
    %48 = vector.broadcast %cst_21 : f32 to vector<2x16x16xf32>
    %49 = arith.mulf %47, %48 : vector<2x16x16xf32>
    %50 = vector.shape_cast %17 : vector<1x16xf32> to vector<1x1x16xf32>
    %51 = vector.broadcast %50 : vector<1x1x16xf32> to vector<2x16x16xf32>
    %52 = arith.addf %49, %51 : vector<2x16x16xf32>
    %cst_22 = arith.constant dense<0xFF800000> : vector<2x16xf32>
    %53 = vector.multi_reduction <maximumf>, %52, %cst_22 [2] : vector<2x16x16xf32> to vector<2x16xf32>
    %54 = vector.shape_cast %53 : vector<2x16xf32> to vector<2x16x1xf32>
    %55 = vector.broadcast %54 : vector<2x16x1xf32> to vector<2x16x16xf32>
    %56 = arith.subf %52, %55 : vector<2x16x16xf32>
    %57 = math.exp %56 : vector<2x16x16xf32>
    %cst_23 = arith.constant dense<0.000000e+00> : vector<2x16xf32>
    %58 = vector.multi_reduction <add>, %57, %cst_23 [2] : vector<2x16x16xf32> to vector<2x16xf32>
    %59 = vector.shape_cast %58 : vector<2x16xf32> to vector<2x16x1xf32>
    %60 = vector.broadcast %59 : vector<2x16x1xf32> to vector<2x16x16xf32>
    %61 = arith.divf %57, %60 : vector<2x16x16xf32>
    "tpu.trace_start"() <{level = 10 : i32, message = "bqk,bkd->bqd"}> : () -> ()
    %cst_24 = arith.constant dense<0.000000e+00> : vector<2x16x8xf32>
    %62 = tpu.matmul %61, %46, %cst_24 {dimension_numbers = #tpu.dot_dimension_numbers<[2], [1], [1], [2], [0, 0, 0, 1, 1, 2], [0], [0]>} : vector<2x16x16xf32>, vector<2x16x8xf32>, vector<2x16x8xf32> -> vector<2x16x8xf32>
    "tpu.trace_stop"() : () -> ()
    %63 = vector.shape_cast %62 : vector<2x16x8xf32> to vector<32x8xf32>
    %64 = vector.extract_strided_slice %19 {offsets = [8, 0], sizes = [8, 32], strides = [1, 1]} : vector<32x32xf32> to vector<8x32xf32>
    %cst_25 = arith.constant dense<0.000000e+00> : vector<32x32xf32>
    %65 = tpu.matmul %63, %64, %cst_25 {dimension_numbers = #tpu.dot_dimension_numbers<[1], [0], [0], [1], [0, 0, 1, 1], [], []>} : vector<32x8xf32>, vector<8x32xf32>, vector<32x32xf32> -> vector<32x32xf32>
    %66 = arith.addf %43, %65 : vector<32x32xf32>
    %67 = vector.extract_strided_slice %11 {offsets = [0, 0, 16], sizes = [2, 16, 8], strides = [1, 1, 1]} : vector<2x16x96xf32> to vector<2x16x8xf32>
    %68 = vector.extract_strided_slice %11 {offsets = [0, 0, 48], sizes = [2, 16, 8], strides = [1, 1, 1]} : vector<2x16x96xf32> to vector<2x16x8xf32>
    %69 = vector.extract_strided_slice %11 {offsets = [0, 0, 80], sizes = [2, 16, 8], strides = [1, 1, 1]} : vector<2x16x96xf32> to vector<2x16x8xf32>
    "tpu.trace_start"() <{level = 10 : i32, message = "bqd,bkd->bqk"}> : () -> ()
    %cst_26 = arith.constant dense<0.000000e+00> : vector<2x16x16xf32>
    %70 = tpu.matmul %67, %68, %cst_26 {dimension_numbers = #tpu.dot_dimension_numbers<[2], [2], [1], [1], [0, 0, 0, 1, 1, 1], [0], [0]>} : vector<2x16x8xf32>, vector<2x16x8xf32>, vector<2x16x16xf32> -> vector<2x16x16xf32>
    "tpu.trace_stop"() : () -> ()
    %cst_27 = arith.constant 0.353553385 : f32
    %71 = vector.broadcast %cst_27 : f32 to vector<2x16x16xf32>
    %72 = arith.mulf %70, %71 : vector<2x16x16xf32>
    %73 = vector.shape_cast %17 : vector<1x16xf32> to vector<1x1x16xf32>
    %74 = vector.broadcast %73 : vector<1x1x16xf32> to vector<2x16x16xf32>
    %75 = arith.addf %72, %74 : vector<2x16x16xf32>
    %cst_28 = arith.constant dense<0xFF800000> : vector<2x16xf32>
    %76 = vector.multi_reduction <maximumf>, %75, %cst_28 [2] : vector<2x16x16xf32> to vector<2x16xf32>
    %77 = vector.shape_cast %76 : vector<2x16xf32> to vector<2x16x1xf32>
    %78 = vector.broadcast %77 : vector<2x16x1xf32> to vector<2x16x16xf32>
    %79 = arith.subf %75, %78 : vector<2x16x16xf32>
    %80 = math.exp %79 : vector<2x16x16xf32>
    %cst_29 = arith.constant dense<0.000000e+00> : vector<2x16xf32>
    %81 = vector.multi_reduction <add>, %80, %cst_29 [2] : vector<2x16x16xf32> to vector<2x16xf32>
    %82 = vector.shape_cast %81 : vector<2x16xf32> to vector<2x16x1xf32>
    %83 = vector.broadcast %82 : vector<2x16x1xf32> to vector<2x16x16xf32>
    %84 = arith.divf %80, %83 : vector<2x16x16xf32>
    "tpu.trace_start"() <{level = 10 : i32, message = "bqk,bkd->bqd"}> : () -> ()
    %cst_30 = arith.constant dense<0.000000e+00> : vector<2x16x8xf32>
    %85 = tpu.matmul %84, %69, %cst_30 {dimension_numbers = #tpu.dot_dimension_numbers<[2], [1], [1], [2], [0, 0, 0, 1, 1, 2], [0], [0]>} : vector<2x16x16xf32>, vector<2x16x8xf32>, vector<2x16x8xf32> -> vector<2x16x8xf32>
    "tpu.trace_stop"() : () -> ()
    %86 = vector.shape_cast %85 : vector<2x16x8xf32> to vector<32x8xf32>
    %87 = vector.extract_strided_slice %19 {offsets = [16, 0], sizes = [8, 32], strides = [1, 1]} : vector<32x32xf32> to vector<8x32xf32>
    %cst_31 = arith.constant dense<0.000000e+00> : vector<32x32xf32>
    %88 = tpu.matmul %86, %87, %cst_31 {dimension_numbers = #tpu.dot_dimension_numbers<[1], [0], [0], [1], [0, 0, 1, 1], [], []>} : vector<32x8xf32>, vector<8x32xf32>, vector<32x32xf32> -> vector<32x32xf32>
    %89 = arith.addf %66, %88 : vector<32x32xf32>
    %90 = vector.extract_strided_slice %11 {offsets = [0, 0, 24], sizes = [2, 16, 8], strides = [1, 1, 1]} : vector<2x16x96xf32> to vector<2x16x8xf32>
    %91 = vector.extract_strided_slice %11 {offsets = [0, 0, 56], sizes = [2, 16, 8], strides = [1, 1, 1]} : vector<2x16x96xf32> to vector<2x16x8xf32>
    %92 = vector.extract_strided_slice %11 {offsets = [0, 0, 88], sizes = [2, 16, 8], strides = [1, 1, 1]} : vector<2x16x96xf32> to vector<2x16x8xf32>
    "tpu.trace_start"() <{level = 10 : i32, message = "bqd,bkd->bqk"}> : () -> ()
    %cst_32 = arith.constant dense<0.000000e+00> : vector<2x16x16xf32>
    %93 = tpu.matmul %90, %91, %cst_32 {dimension_numbers = #tpu.dot_dimension_numbers<[2], [2], [1], [1], [0, 0, 0, 1, 1, 1], [0], [0]>} : vector<2x16x8xf32>, vector<2x16x8xf32>, vector<2x16x16xf32> -> vector<2x16x16xf32>
    "tpu.trace_stop"() : () -> ()
    %cst_33 = arith.constant 0.353553385 : f32
    %94 = vector.broadcast %cst_33 : f32 to vector<2x16x16xf32>
    %95 = arith.mulf %93, %94 : vector<2x16x16xf32>
    %96 = vector.shape_cast %17 : vector<1x16xf32> to vector<1x1x16xf32>
    %97 = vector.broadcast %96 : vector<1x1x16xf32> to vector<2x16x16xf32>
    %98 = arith.addf %95, %97 : vector<2x16x16xf32>
    %cst_34 = arith.constant dense<0xFF800000> : vector<2x16xf32>
    %99 = vector.multi_reduction <maximumf>, %98, %cst_34 [2] : vector<2x16x16xf32> to vector<2x16xf32>
    %100 = vector.shape_cast %99 : vector<2x16xf32> to vector<2x16x1xf32>
    %101 = vector.broadcast %100 : vector<2x16x1xf32> to vector<2x16x16xf32>
    %102 = arith.subf %98, %101 : vector<2x16x16xf32>
    %103 = math.exp %102 : vector<2x16x16xf32>
    %cst_35 = arith.constant dense<0.000000e+00> : vector<2x16xf32>
    %104 = vector.multi_reduction <add>, %103, %cst_35 [2] : vector<2x16x16xf32> to vector<2x16xf32>
    %105 = vector.shape_cast %104 : vector<2x16xf32> to vector<2x16x1xf32>
    %106 = vector.broadcast %105 : vector<2x16x1xf32> to vector<2x16x16xf32>
    %107 = arith.divf %103, %106 : vector<2x16x16xf32>
    "tpu.trace_start"() <{level = 10 : i32, message = "bqk,bkd->bqd"}> : () -> ()
    %cst_36 = arith.constant dense<0.000000e+00> : vector<2x16x8xf32>
    %108 = tpu.matmul %107, %92, %cst_36 {dimension_numbers = #tpu.dot_dimension_numbers<[2], [1], [1], [2], [0, 0, 0, 1, 1, 2], [0], [0]>} : vector<2x16x16xf32>, vector<2x16x8xf32>, vector<2x16x8xf32> -> vector<2x16x8xf32>
    "tpu.trace_stop"() : () -> ()
    %109 = vector.shape_cast %108 : vector<2x16x8xf32> to vector<32x8xf32>
    %110 = vector.extract_strided_slice %19 {offsets = [24, 0], sizes = [8, 32], strides = [1, 1]} : vector<32x32xf32> to vector<8x32xf32>
    %cst_37 = arith.constant dense<0.000000e+00> : vector<32x32xf32>
    %111 = tpu.matmul %109, %110, %cst_37 {dimension_numbers = #tpu.dot_dimension_numbers<[1], [0], [0], [1], [0, 0, 1, 1], [], []>} : vector<32x8xf32>, vector<8x32xf32>, vector<32x32xf32> -> vector<32x32xf32>
    %112 = arith.addf %89, %111 : vector<32x32xf32>
    %c0_38 = arith.constant 0 : index
    %c0_39 = arith.constant 0 : index
    %c0_40 = arith.constant 0 : index
    %113 = vector.load %arg8[%c0_38, %c0_39, %c0_40] : memref<1x1x32xf32, #tpu.memory_space<vmem>>, vector<1x1x32xf32>
    %114 = vector.shape_cast %113 : vector<1x1x32xf32> to vector<1x32xf32>
    %115 = vector.broadcast %114 : vector<1x32xf32> to vector<32x32xf32>
    %116 = arith.addf %112, %115 : vector<32x32xf32>
    %117 = arith.addf %3, %116 : vector<32x32xf32>
    %c0_41 = arith.constant 0 : index
    %c0_42 = arith.constant 0 : index
    %c0_43 = arith.constant 0 : index
    %118 = vector.load %arg9[%c0_41, %c0_42, %c0_43] : memref<1x1x32xf32, #tpu.memory_space<vmem>>, vector<1x1x32xf32>
    %119 = vector.shape_cast %118 : vector<1x1x32xf32> to vector<1x32xf32>
    %c0_44 = arith.constant 0 : index
    %c0_45 = arith.constant 0 : index
    %c0_46 = arith.constant 0 : index
    %120 = vector.load %arg10[%c0_44, %c0_45, %c0_46] : memref<1x1x32xf32, #tpu.memory_space<vmem>>, vector<1x1x32xf32>
    %121 = vector.shape_cast %120 : vector<1x1x32xf32> to vector<1x32xf32>
    %cst_47 = arith.constant dense<0.000000e+00> : vector<32xf32>
    %122 = vector.multi_reduction <add>, %117, %cst_47 [1] : vector<32x32xf32> to vector<32xf32>
    %123 = vector.shape_cast %122 : vector<32xf32> to vector<32x1xf32>
    %cst_48 = arith.constant 3.200000e+01 : f32
    %124 = vector.broadcast %cst_48 : f32 to vector<32x1xf32>
    %125 = arith.divf %123, %124 : vector<32x1xf32>
    %126 = vector.broadcast %125 : vector<32x1xf32> to vector<32x32xf32>
    %127 = arith.subf %117, %126 : vector<32x32xf32>
    %128 = arith.mulf %127, %127 : vector<32x32xf32>
    %cst_49 = arith.constant dense<0.000000e+00> : vector<32xf32>
    %129 = vector.multi_reduction <add>, %128, %cst_49 [1] : vector<32x32xf32> to vector<32xf32>
    %130 = vector.shape_cast %129 : vector<32xf32> to vector<32x1xf32>
    %cst_50 = arith.constant 3.200000e+01 : f32
    %131 = vector.broadcast %cst_50 : f32 to vector<32x1xf32>
    %132 = arith.divf %130, %131 : vector<32x1xf32>
    %cst_51 = arith.constant 9.99999974E-6 : f32
    %133 = vector.broadcast %cst_51 : f32 to vector<32x1xf32>
    %134 = arith.addf %132, %133 : vector<32x1xf32>
    %135 = math.rsqrt %134 : vector<32x1xf32>
    %136 = vector.broadcast %135 : vector<32x1xf32> to vector<32x32xf32>
    %137 = arith.mulf %127, %136 : vector<32x32xf32>
    %138 = vector.broadcast %119 : vector<1x32xf32> to vector<32x32xf32>
    %139 = arith.mulf %137, %138 : vector<32x32xf32>
    %140 = vector.broadcast %121 : vector<1x32xf32> to vector<32x32xf32>
    %141 = arith.addf %139, %140 : vector<32x32xf32>
    %c0_52 = arith.constant 0 : index
    %c0_53 = arith.constant 0 : index
    %c0_54 = arith.constant 0 : index
    %142 = vector.load %arg13[%c0_52, %c0_53, %c0_54] : memref<1x32x64xf32, #tpu.memory_space<vmem>>, vector<1x32x64xf32>
    %143 = vector.shape_cast %142 : vector<1x32x64xf32> to vector<32x64xf32>
    %cst_55 = arith.constant dense<0.000000e+00> : vector<32x64xf32>
    %144 = tpu.matmul %141, %143, %cst_55 {dimension_numbers = #tpu.dot_dimension_numbers<[1], [0], [0], [1], [0, 0, 1, 1], [], []>} : vector<32x32xf32>, vector<32x64xf32>, vector<32x64xf32> -> vector<32x64xf32>
    %c0_56 = arith.constant 0 : index
    %c0_57 = arith.constant 0 : index
    %c0_58 = arith.constant 0 : index
    %145 = vector.load %arg14[%c0_56, %c0_57, %c0_58] : memref<1x1x64xf32, #tpu.memory_space<vmem>>, vector<1x1x64xf32>
    %146 = vector.shape_cast %145 : vector<1x1x64xf32> to vector<1x64xf32>
    %147 = vector.broadcast %146 : vector<1x64xf32> to vector<32x64xf32>
    %148 = arith.addf %144, %147 : vector<32x64xf32>
    %cst_59 = arith.constant 0.000000e+00 : f32
    %149 = vector.broadcast %cst_59 : f32 to vector<32x64xf32>
    %150 = arith.maximumf %148, %149 : vector<32x64xf32>
    %c0_60 = arith.constant 0 : index
    %c0_61 = arith.constant 0 : index
    %c0_62 = arith.constant 0 : index
    %151 = vector.load %arg15[%c0_60, %c0_61, %c0_62] : memref<1x64x32xf32, #tpu.memory_space<vmem>>, vector<1x64x32xf32>
    %152 = vector.shape_cast %151 : vector<1x64x32xf32> to vector<64x32xf32>
    %cst_63 = arith.constant dense<0.000000e+00> : vector<32x32xf32>
    %153 = tpu.matmul %150, %152, %cst_63 {dimension_numbers = #tpu.dot_dimension_numbers<[1], [0], [0], [1], [0, 0, 1, 1], [], []>} : vector<32x64xf32>, vector<64x32xf32>, vector<32x32xf32> -> vector<32x32xf32>
    %c0_64 = arith.constant 0 : index
    %c0_65 = arith.constant 0 : index
    %c0_66 = arith.constant 0 : index
    %154 = vector.load %arg16[%c0_64, %c0_65, %c0_66] : memref<1x1x32xf32, #tpu.memory_space<vmem>>, vector<1x1x32xf32>
    %155 = vector.shape_cast %154 : vector<1x1x32xf32> to vector<1x32xf32>
    %156 = vector.broadcast %155 : vector<1x32xf32> to vector<32x32xf32>
    %157 = arith.addf %153, %156 : vector<32x32xf32>
    %158 = arith.addf %141, %157 : vector<32x32xf32>
    %c0_67 = arith.constant 0 : index
    %c0_68 = arith.constant 0 : index
    %c0_69 = arith.constant 0 : index
    %159 = vector.load %arg11[%c0_67, %c0_68, %c0_69] : memref<1x1x32xf32, #tpu.memory_space<vmem>>, vector<1x1x32xf32>
    %160 = vector.shape_cast %159 : vector<1x1x32xf32> to vector<1x32xf32>
    %c0_70 = arith.constant 0 : index
    %c0_71 = arith.constant 0 : index
    %c0_72 = arith.constant 0 : index
    %161 = vector.load %arg12[%c0_70, %c0_71, %c0_72] : memref<1x1x32xf32, #tpu.memory_space<vmem>>, vector<1x1x32xf32>
    %162 = vector.shape_cast %161 : vector<1x1x32xf32> to vector<1x32xf32>
    %cst_73 = arith.constant dense<0.000000e+00> : vector<32xf32>
    %163 = vector.multi_reduction <add>, %158, %cst_73 [1] : vector<32x32xf32> to vector<32xf32>
    %164 = vector.shape_cast %163 : vector<32xf32> to vector<32x1xf32>
    %cst_74 = arith.constant 3.200000e+01 : f32
    %165 = vector.broadcast %cst_74 : f32 to vector<32x1xf32>
    %166 = arith.divf %164, %165 : vector<32x1xf32>
    %167 = vector.broadcast %166 : vector<32x1xf32> to vector<32x32xf32>
    %168 = arith.subf %158, %167 : vector<32x32xf32>
    %169 = arith.mulf %168, %168 : vector<32x32xf32>
    %cst_75 = arith.constant dense<0.000000e+00> : vector<32xf32>
    %170 = vector.multi_reduction <add>, %169, %cst_75 [1] : vector<32x32xf32> to vector<32xf32>
    %171 = vector.shape_cast %170 : vector<32xf32> to vector<32x1xf32>
    %cst_76 = arith.constant 3.200000e+01 : f32
    %172 = vector.broadcast %cst_76 : f32 to vector<32x1xf32>
    %173 = arith.divf %171, %172 : vector<32x1xf32>
    %cst_77 = arith.constant 9.99999974E-6 : f32
    %174 = vector.broadcast %cst_77 : f32 to vector<32x1xf32>
    %175 = arith.addf %173, %174 : vector<32x1xf32>
    %176 = math.rsqrt %175 : vector<32x1xf32>
    %177 = vector.broadcast %176 : vector<32x1xf32> to vector<32x32xf32>
    %178 = arith.mulf %168, %177 : vector<32x32xf32>
    %179 = vector.broadcast %160 : vector<1x32xf32> to vector<32x32xf32>
    %180 = arith.mulf %178, %179 : vector<32x32xf32>
    %181 = vector.broadcast %162 : vector<1x32xf32> to vector<32x32xf32>
    %182 = arith.addf %180, %181 : vector<32x32xf32>
    %c0_78 = arith.constant 0 : index
    %c0_79 = arith.constant 0 : index
    %183 = vector.load %arg20[%c0_78, %c0_79] : memref<32x32xf32, #tpu.memory_space<vmem>>, vector<32x32xf32>
    tpu.vector_store %arg20[%c0_78, %c0_79], %182 {strides = array<i32>} : memref<32x32xf32, #tpu.memory_space<vmem>>, vector<32x32xf32>,
    %c2_i32 = arith.constant 2 : i32
    %184 = arith.cmpi eq, %arg1, %c2_i32 : i32
    %185 = arith.extui %184 : i1 to i32
    %c0_i32_80 = arith.constant 0 : i32
    %186 = arith.cmpi ne, %185, %c0_i32_80 : i32
    scf.if %186 {
      %187 = vector.shape_cast %182 : vector<32x32xf32> to vector<2x16x32xf32>
      %188 = vector.extract_strided_slice %187 {offsets = [0, 0, 0], sizes = [2, 1, 32], strides = [1, 1, 1]} : vector<2x16x32xf32> to vector<2x1x32xf32>
      %189 = vector.shape_cast %188 : vector<2x1x32xf32> to vector<2x32xf32>
      %c0_81 = arith.constant 0 : index
      %c0_82 = arith.constant 0 : index
      %190 = vector.load %arg17[%c0_81, %c0_82] : memref<32x1xf32, #tpu.memory_space<vmem>>, vector<32x1xf32>
      %cst_83 = arith.constant dense<0.000000e+00> : vector<2x1xf32>
      %191 = tpu.matmul %189, %190, %cst_83 {dimension_numbers = #tpu.dot_dimension_numbers<[1], [0], [0], [1], [0, 0, 1, 1], [], []>} : vector<2x32xf32>, vector<32x1xf32>, vector<2x1xf32> -> vector<2x1xf32>
      %c0_84 = arith.constant 0 : index
      %c0_85 = arith.constant 0 : index
      %192 = vector.load %arg18[%c0_84, %c0_85] : memref<1x1xf32, #tpu.memory_space<vmem>>, vector<1x1xf32>
      %193 = vector.broadcast %192 : vector<1x1xf32> to vector<2x1xf32>
      %194 = arith.addf %191, %193 : vector<2x1xf32>
      %c0_86 = arith.constant 0 : index
      %c0_87 = arith.constant 0 : index
      %195 = vector.load %arg19[%c0_86, %c0_87] : memref<2x1xf32, #tpu.memory_space<vmem>>, vector<2x1xf32>
      tpu.vector_store %arg19[%c0_86, %c0_87], %194 {strides = array<i32>} : memref<2x1xf32, #tpu.memory_space<vmem>>, vector<2x1xf32>,
    } else {
    }
    return
  }
  func.func @transform_0(%arg0: i32, %arg1: i32) -> (i32, i32) {
    %c0_i32 = arith.constant 0 : i32
    %c0_i32_0 = arith.constant 0 : i32
    return %arg0, %c0_i32 : i32, i32
  }
  func.func @transform_1(%arg0: i32, %arg1: i32) -> (i32, i32) {
    %c0_i32 = arith.constant 0 : i32
    %c0_i32_0 = arith.constant 0 : i32
    %c0_i32_1 = arith.constant 0 : i32
    return %c0_i32, %c0_i32_0 : i32, i32
  }
  func.func @transform_2(%arg0: i32, %arg1: i32) -> (i32, i32) {
    %c0_i32 = arith.constant 0 : i32
    %c0_i32_0 = arith.constant 0 : i32
    %c0_i32_1 = arith.constant 0 : i32
    return %c0_i32, %c0_i32_0 : i32, i32
  }
  func.func @transform_3(%arg0: i32, %arg1: i32) -> (i32, i32, i32) {
    %c0_i32 = arith.constant 0 : i32
    %c0_i32_0 = arith.constant 0 : i32
    %c0_i32_1 = arith.constant 0 : i32
    return %arg1, %c0_i32, %c0_i32_0 : i32, i32, i32
  }
  func.func @transform_4(%arg0: i32, %arg1: i32) -> (i32, i32, i32) {
    %c0_i32 = arith.constant 0 : i32
    %c0_i32_0 = arith.constant 0 : i32
    %c0_i32_1 = arith.constant 0 : i32
    return %arg1, %c0_i32, %c0_i32_0 : i32, i32, i32
  }
  func.func @transform_5(%arg0: i32, %arg1: i32) -> (i32, i32, i32) {
    %c0_i32 = arith.constant 0 : i32
    %c0_i32_0 = arith.constant 0 : i32
    %c0_i32_1 = arith.constant 0 : i32
    return %arg1, %c0_i32, %c0_i32_0 : i32, i32, i32
  }
  func.func @transform_6(%arg0: i32, %arg1: i32) -> (i32, i32, i32) {
    %c0_i32 = arith.constant 0 : i32
    %c0_i32_0 = arith.constant 0 : i32
    %c0_i32_1 = arith.constant 0 : i32
    return %arg1, %c0_i32, %c0_i32_0 : i32, i32, i32
  }
  func.func @transform_7(%arg0: i32, %arg1: i32) -> (i32, i32, i32) {
    %c0_i32 = arith.constant 0 : i32
    %c0_i32_0 = arith.constant 0 : i32
    %c0_i32_1 = arith.constant 0 : i32
    return %arg1, %c0_i32, %c0_i32_0 : i32, i32, i32
  }
  func.func @transform_8(%arg0: i32, %arg1: i32) -> (i32, i32, i32) {
    %c0_i32 = arith.constant 0 : i32
    %c0_i32_0 = arith.constant 0 : i32
    %c0_i32_1 = arith.constant 0 : i32
    return %arg1, %c0_i32, %c0_i32_0 : i32, i32, i32
  }
  func.func @transform_9(%arg0: i32, %arg1: i32) -> (i32, i32, i32) {
    %c0_i32 = arith.constant 0 : i32
    %c0_i32_0 = arith.constant 0 : i32
    %c0_i32_1 = arith.constant 0 : i32
    return %arg1, %c0_i32, %c0_i32_0 : i32, i32, i32
  }
  func.func @transform_10(%arg0: i32, %arg1: i32) -> (i32, i32, i32) {
    %c0_i32 = arith.constant 0 : i32
    %c0_i32_0 = arith.constant 0 : i32
    %c0_i32_1 = arith.constant 0 : i32
    return %arg1, %c0_i32, %c0_i32_0 : i32, i32, i32
  }
  func.func @transform_11(%arg0: i32, %arg1: i32) -> (i32, i32, i32) {
    %c0_i32 = arith.constant 0 : i32
    %c0_i32_0 = arith.constant 0 : i32
    %c0_i32_1 = arith.constant 0 : i32
    return %arg1, %c0_i32, %c0_i32_0 : i32, i32, i32
  }
  func.func @transform_12(%arg0: i32, %arg1: i32) -> (i32, i32, i32) {
    %c0_i32 = arith.constant 0 : i32
    %c0_i32_0 = arith.constant 0 : i32
    %c0_i32_1 = arith.constant 0 : i32
    return %arg1, %c0_i32, %c0_i32_0 : i32, i32, i32
  }
  func.func @transform_13(%arg0: i32, %arg1: i32) -> (i32, i32, i32) {
    %c0_i32 = arith.constant 0 : i32
    %c0_i32_0 = arith.constant 0 : i32
    %c0_i32_1 = arith.constant 0 : i32
    return %arg1, %c0_i32, %c0_i32_0 : i32, i32, i32
  }
  func.func @transform_14(%arg0: i32, %arg1: i32) -> (i32, i32, i32) {
    %c0_i32 = arith.constant 0 : i32
    %c0_i32_0 = arith.constant 0 : i32
    %c0_i32_1 = arith.constant 0 : i32
    return %arg1, %c0_i32, %c0_i32_0 : i32, i32, i32
  }
  func.func @transform_15(%arg0: i32, %arg1: i32) -> (i32, i32) {
    %c0_i32 = arith.constant 0 : i32
    %c0_i32_0 = arith.constant 0 : i32
    %c0_i32_1 = arith.constant 0 : i32
    return %c0_i32, %c0_i32_0 : i32, i32
  }
  func.func @transform_16(%arg0: i32, %arg1: i32) -> (i32, i32) {
    %c0_i32 = arith.constant 0 : i32
    %c0_i32_0 = arith.constant 0 : i32
    %c0_i32_1 = arith.constant 0 : i32
    return %c0_i32, %c0_i32_0 : i32, i32
  }
  func.func @transform_17(%arg0: i32, %arg1: i32) -> (i32, i32) {
    %c0_i32 = arith.constant 0 : i32
    %c0_i32_0 = arith.constant 0 : i32
    return %arg0, %c0_i32 : i32, i32
  }
}

</mosaic_0001>

<bundles_post_ra>
// kernel: tpu_custom_call.1
= control target key start
LH: loop header
LB: loop body
LE: loop exit
PB: predicated region body
PF: predicated region fallthrough
CT: control target
= control target key end

     0   :  { %s5750_s0 = inlined_call_operand.vmem [shape: f32[32,16], index: 0, kind: input, shape index: {}]   ;;  %s5751_s1 = inlined_call_operand.vmem [shape: f32[16,32], index: 1, kind: input, shape index: {}]   ;;  %s5752_s2 = inlined_call_operand.vmem [shape: f32[16,32], index: 2, kind: input, shape index: {}]   ;;  %s5753_s3 = inlined_call_operand.vmem [shape: f32[3,32,96], index: 3, kind: input, shape index: {}]   ;;  %s5754_s4 = inlined_call_operand.vmem [shape: f32[3,1,96], index: 4, kind: input, shape index: {}]   ;;  %s5755_s5 = inlined_call_operand.vmem [shape: f32[3,32,32], index: 5, kind: input, shape index: {}]   ;;  %s5756_s6 = inlined_call_operand.vmem [shape: f32[3,1,32], index: 6, kind: input, shape index: {}]   ;;  %s5757_s7 = inlined_call_operand.hbm [shape: f32[3,1,32], index: 7, kind: input, shape index: {}]   ;;  %s5758_s8 = inlined_call_operand.hbm [shape: f32[3,1,32], index: 8, kind: input, shape index: {}]   ;;  %s5759_s9 = inlined_call_operand.hbm [shape: f32[3,1,32], index: 9, kind: input, shape index: {}]   ;;  %s5760_s10 = inlined_call_operand.hbm [shape: f32[3,1,32], index: 10, kind: input, shape index: {}]   ;;  %s5761_s11 = inlined_call_operand.vmem [shape: f32[3,32,64], index: 11, kind: input, shape index: {}]   ;;  %s5762_s12 = inlined_call_operand.hbm [shape: f32[3,1,64], index: 12, kind: input, shape index: {}]   ;;  %s5763_s13 = inlined_call_operand.vmem [shape: f32[3,64,32], index: 13, kind: input, shape index: {}]   ;;  %s5764_s14 = inlined_call_operand.hbm [shape: f32[3,1,32], index: 14, kind: input, shape index: {}]   ;;  %s5765_s15 = inlined_call_operand.vmem [shape: f32[32,1], index: 15, kind: input, shape index: {}]   ;;  %s5766_s16 = inlined_call_operand.<no memory space> [shape: f32[1,1], index: 16, kind: input, shape index: {}]   ;;  %s5767_s17 = inlined_call_operand.vmem [shape: f32[2,1], index: 17, kind: output, shape index: {}]  }
   0x1   :  { %5780 = sst [smem:[#allocation22_spill]] %s5750_s0  ;;  %v22_v0 = vstv %s5766_s16 }
   0x2   :  { %5781 = sst [smem:[#allocation23_spill]] %s5751_s1  ;;  %23 = vst [vmem:[#allocation3] sm:$0x1] %v22_v0 }
   0x3   :  { %5782 = sst [smem:[#allocation24_spill]] %s5752_s2 }
   0x4   :  { %5783 = sst [smem:[#allocation25_spill]] %s5758_s8 }
   0x5   :  { %5784 = sst [smem:[#allocation26_spill]] %s5760_s10 }
   0x6   :  { %5785 = sst [smem:[#allocation27_spill]] %s5761_s11 }
   0x7   :  { %5786 = sst [smem:[#allocation28_spill]] %s5763_s13 }
   0x8   :  { %5787 = sst [smem:[#allocation29_spill]] %s5765_s15 }
   0x9   :  { %5788 = sst [smem:[#allocation30_spill]] %s5767_s17 }
   0xa   :  { %24 = vsyncpa [#allocation5], 0 }
   0xb   :  { %26 = vsyncpa [#allocation5 + $0x1], 0 }
   0xc   :  { %27 = vsyncpa [#allocation7], 0 }
   0xd   :  { %29 = vsyncpa [#allocation7 + $0x1], 0 }
   0xe   :  { %30 = vsyncpa [#allocation10], 0 }
   0xf   :  { %32 = vsyncpa [#allocation10 + $0x1], 0 }
  0x10   :  { %33 = vsyncpa [#allocation13], 0 }
  0x11   :  { %35 = vsyncpa [#allocation13 + $0x1], 0  ;;  %s5077_s26 = smov 0   ;;  %s5079_s27 = smov 0  }
  0x12   :  { %s5081_s28 = smov 0   ;;  %s5083_s29 = smov 0  }
  0x13   :  { %s5085_s0 = smov 0   ;;  %s5087_s16 = smov 0  }
  0x14 LB: > { %5789 = sst [smem:[#allocation18_spill]] %s4949_s28  ;;  %s5770_s30 = sadd.s32 4294967295, %s4961_s16   ;;  %s4961_s16 = sphi %s5087_s16, %s41_s16   ;;  %s4957_s0 = sphi %s5085_s0, %s5829_s0   ;;  %s4953_s29 = sphi %s5083_s29, %s5828_s29   ;;  %s4949_s28 = sphi %s5081_s28, %s5827_s28   ;;  %s4945_s27 = sphi %s5079_s27, %s5831_s27   ;;  %s4941_s26 = sphi %s5077_s26, %s5830_s26  }
  0x15   : > { %5790 = sst [smem:[#allocation19_spill]] %s4957_s0  ;;  %s50_s18 = sadd.s32 1, %s4957_s0 }
  0x16   : > { %p51_p0 = scmp.ge.s32.totalorder %s50_s18, 3  ;;  %s232_s19 = sadd.s32 1, %s4949_s28 }
  0x17   : > { %p239_p1 = scmp.ne.s32.totalorder %s4949_s28, %s4945_s27  ;;  %p240_p2 = scmp.eq.s32.totalorder %s4961_s16, 0 }
  0x18   : > { %s5833_s18 = smov (%p51_p0, %s50_s18), 0  ;;  %p245_p4 = scmp.ne.s32.totalorder %s4945_s27, %s4941_s26 }
  0x19   : > { %5791 = sst [smem:[#allocation20_spill]] %s5833_s18  ;;  %p241_p3 = por %p240_p2, %p239_p1 }
  0x1a   : > { %s229_s1 = ssub.s32 %s4957_s0, %s5833_s18  ;;  %p246_p5 = scmp.eq.s32.totalorder %s5770_s30, 0 }
  0x1b   : > { %p230_p6 = scmp.eq.s32.totalorder %s229_s1, 0  ;;  %p4491_p8 = scmp.lt.s32.totalorder %s4961_s16, 3 }
  0x1c   : > { %p5118_p7 = por %p246_p5, %p245_p4  ;;  %s5127_s22 = sand.u32 1, %s4949_s28  }
  0x1d   : > { %s5124_s21 = scalar_select %p230_p6, %s4949_s28, %s232_s19  }
  0x1e   : > { %s5792_s20 = scalar_select %p5118_p7, 1, 0 }
  0x1f   : > { %5793 = sst [smem:[#allocation21_spill]] %s5124_s21  ;;  %s5130_s23 = sshll.u32 %s4957_s0, 4 }
  0x20   : > { %p5132_p9 = pnand %p4491_p8, %p241_p3  ;;  %s5775_s25 = sand.u32 1, %s4961_s16  }
  0x21   : > { %s5795_s8 = sld [smem:[#allocation25_spill]]  ;;  %s588_s19 = scalar_lea.vmem [#allocation6], %s5127_s22 }
  0x22   : > { %s5794_s24 = scalar_select %p5132_p9, 1, 0 }
  0x23   : > { %s595_s18 = sshll.u32 %s588_s19, 4  ;;  %s5150_s0 = scalar_lea.sflag [#allocation7], %s5775_s25  ;;  %s5145_s18 = int_to_ptr.vmem [resolvable:$true] %s595_s18 }
  0x24   : > { %p5156_p13 = pneg %p5132_p9 }
  0x27   : > { %s5141_s30 = scalar_lea.hbm %s5795_s8, %s5130_s23  ;;  %s4724_s28 = scalar_lea.hbm %s5795_s8, 48 }
  0x28   : > { %s4719_s21 = scalar_lea.hbm %s5141_s30, 16  ;;  %p4725_p2 = scmp.lt.u32.totalorder %s5141_s30, %s5795_s8 }
  0x29   : > { %p4720_p12 = scmp.ne.s32.totalorder %s5141_s30, %s4719_s21  ;;  %p4726_p3 = scmp.lt.u32.totalorder %s4724_s28, %s4719_s21 }
  0x2a   : > { %p4728_p5 = scmp.lt.u32.totalorder %s4719_s21, %s5141_s30 }
  0x2b   : > { %p4722_p0 = pnand %p5156_p13, %p4720_p12  ;;  %p4727_p4 = por %p4726_p3, %p4725_p2 }
  0x2d   : > { %p4723_p1 = pneg %p4722_p0  ;;  %p4729_p6 = por %p4728_p5, %p4727_p4 }
  0x2f   : > { %p4730_p8 = pnand %p4729_p6, %p4723_p1 }
  0x31   : > { %4733 = shalt.err (!%p4730_p8)
}
  0x32   : > { %s4734_s25 = scalar_lea.vmem %s5145_s18, 16  ;;  %s4963_s1 = smov [#allocation6]  }
  0x33   : > { %p4735_p12 = scmp.ne.s32.totalorder %s5145_s18, %s4734_s25  ;;  %s4739_s19 = sshll.u32 %s4963_s1, 4  ;;  %s4740_s19 = int_to_ptr.vmem [resolvable:$false] %s4739_s19 }
  0x34   : > { %s4741_s15 = scalar_lea.vmem %s4740_s19, 32  ;;  %p4742_p11 = scmp.lt.s32.totalorder %s5145_s18, %s4740_s19 }
  0x35   : > { %p4737_p0 = pnand %p4735_p12, %p5156_p13  ;;  %p4743_p7 = scmp.lt.s32.totalorder %s4741_s15, %s4734_s25 }
  0x37   : > { %p4738_p10 = pneg %p4737_p0  ;;  %p4744_p2 = por %p4743_p7, %p4742_p11 }
  0x39   : > { %p4745_p3 = pnand %p4744_p2, %p4738_p10 }
  0x3b   : > { %4748 = shalt.err (!%p4745_p3)
}
  0x3c   : > { %4478 = dma.hbm_to_vmem [thread:$0]  (!%p5132_p9), %s5141_s30, 16, %s5145_s18, %s5150_s0  }
  0x3d   : > { %p5797_p1 = scmp.lt.s32.totalorder %s4961_s16, 4  ;;  %p5798_p4 = scmp.ge.s32.totalorder %s4961_s16, 1 }
  0x3e   : > { %s5800_s10 = sld [smem:[#allocation26_spill]]  ;;  %s622_s1 = scalar_lea.vmem [#allocation9], %s5127_s22 }
  0x3f   : > { %p5184_p5 = pnand %p5798_p4, %p5797_p1  ;;  %s629_s19 = sshll.u32 %s622_s1, 4  ;;  %s630_s19 = int_to_ptr.vmem [resolvable:$true] %s629_s19 }
  0x40   : > { %s5801_s15 = sand.u32 1, %s4961_s16  }
  0x41   : > { %s5799_s17 = scalar_select %p5184_p5, 1, 0 }
  0x42   : > { %s5197_s30 = scalar_lea.sflag [#allocation10], %s5801_s15 }
  0x44   : > { %s5192_s25 = scalar_lea.hbm %s5800_s10, %s5130_s23  ;;  %s4754_s28 = scalar_lea.hbm %s5800_s10, 48 }
  0x45   : > { %s4749_s18 = scalar_lea.hbm %s5192_s25, 16  ;;  %p4755_p6 = scmp.lt.u32.totalorder %s5192_s25, %s5800_s10 }
  0x46   : > { %p4750_p7 = scmp.ne.s32.totalorder %s5192_s25, %s4749_s18  ;;  %p4756_p8 = scmp.lt.u32.totalorder %s4754_s28, %s4749_s18 }
  0x47   : > { %p4758_p0 = scmp.lt.u32.totalorder %s4749_s18, %s5192_s25 }
  0x48   : > { %p4752_p10 = pnand %p4750_p7, %p5156_p13  ;;  %p4757_p12 = por %p4756_p8, %p4755_p6 }
  0x4a   : > { %p4753_p11 = pneg %p4752_p10  ;;  %p4759_p2 = por %p4758_p0, %p4757_p12 }
  0x4c   : > { %p4760_p3 = pnand %p4759_p2, %p4753_p11 }
  0x4e   : > { %4763 = shalt.err (!%p4760_p3)
}
  0x4f   : > { %s4764_s1 = scalar_lea.vmem %s630_s19, 16  ;;  %s4964_s15 = smov [#allocation9]  }
  0x50   : > { %p4765_p1 = scmp.ne.s32.totalorder %s630_s19, %s4764_s1  ;;  %s4769_s11 = sshll.u32 %s4964_s15, 4  ;;  %s4770_s11 = int_to_ptr.vmem [resolvable:$false] %s4769_s11 }
  0x51   : > { %s4771_s2 = scalar_lea.vmem %s4770_s11, 32  ;;  %p4772_p10 = scmp.lt.s32.totalorder %s630_s19, %s4770_s11 }
  0x52   : > { %p4767_p4 = pnand %p4765_p1, %p5156_p13  ;;  %p4773_p5 = scmp.lt.s32.totalorder %s4771_s2, %s4764_s1 }
  0x54   : > { %p4768_p7 = pneg %p4767_p4  ;;  %p4774_p9 = por %p4773_p5, %p4772_p10 }
  0x56   : > { %p4775_p6 = pnand %p4774_p9, %p4768_p7 }
  0x58   : > { %4778 = shalt.err (!%p4775_p6)
}
  0x59   : > { %p5802_p8 = scmp.ne.s32.totalorder %s5794_s24, 0  ;;  %s5221_s18 = scalar_lea.hbm %s5757_s7, %s5130_s23 }
  0x5a   : > { %s571_s11 = scalar_lea.vmem [#allocation4], %s5127_s22  ;;  %s569_s21 = scalar_lea.sflag [#allocation5], %s5127_s22 }
  0x5b   : > { %4484 = dma.hbm_to_vmem [thread:$0]  (!%p5802_p8), %s5192_s25, 16, %s630_s19, %s5197_s30  }
  0x5c   : > { %s578_s28 = sshll.u32 %s571_s11, 4  ;;  %s4779_s1 = scalar_lea.hbm %s5221_s18, 16  ;;  %s579_s28 = int_to_ptr.vmem [resolvable:$true] %s578_s28 }
  0x5d   : > { %p4780_p9 = scmp.ne.s32.totalorder %s5221_s18, %s4779_s1  ;;  %s4784_s19 = scalar_lea.hbm %s5757_s7, 48 }
  0x5e   : > { %p4785_p12 = scmp.lt.u32.totalorder %s5221_s18, %s5757_s7  ;;  %p4786_p0 = scmp.lt.u32.totalorder %s4784_s19, %s4779_s1 }
  0x5f   : > { %p4782_p5 = pnand %p4780_p9, %p5156_p13  ;;  %p4788_p3 = scmp.lt.u32.totalorder %s4779_s1, %s5221_s18 }
  0x60   : > { %p4787_p2 = por %p4786_p0, %p4785_p12 }
  0x61   : > { %p4783_p11 = pneg %p4782_p5 }
  0x62   : > { %p4789_p1 = por %p4788_p3, %p4787_p2 }
  0x64   : > { %p4790_p4 = pnand %p4789_p1, %p4783_p11 }
  0x66   : > { %4793 = shalt.err (!%p4790_p4)
}
  0x67   : > { %s4794_s13 = scalar_lea.vmem %s579_s28, 16  ;;  %s4965_s11 = smov [#allocation4]  }
  0x68   : > { %p4795_p7 = scmp.ne.s32.totalorder %s579_s28, %s4794_s13  ;;  %s4799_s10 = sshll.u32 %s4965_s11, 4  ;;  %s4800_s10 = int_to_ptr.vmem [resolvable:$false] %s4799_s10 }
  0x69   : > { %s4801_s15 = scalar_lea.vmem %s4800_s10, 32  ;;  %p4802_p9 = scmp.lt.s32.totalorder %s579_s28, %s4800_s10 }
  0x6a   : > { %p4797_p10 = pnand %p4795_p7, %p5156_p13  ;;  %p4803_p5 = scmp.lt.s32.totalorder %s4801_s15, %s4794_s13 }
  0x6c   : > { %p4798_p6 = pneg %p4797_p10  ;;  %p4804_p8 = por %p4803_p5, %p4802_p9 }
  0x6e   : > { %p4805_p0 = pnand %p4804_p8, %p4798_p6 }
  0x70   : > { %4808 = shalt.err (!%p4805_p0)
}
  0x71   : > { %p5803_p12 = scmp.ne.s32.totalorder %s5794_s24, 0  ;;  %s5246_s19 = scalar_lea.hbm %s5759_s9, %s5130_s23 }
  0x72   : > { %s605_s10 = scalar_lea.vmem [#allocation8], %s5127_s22  ;;  %s4809_s8 = scalar_lea.hbm %s5246_s19, 16 }
  0x73   : > { %4475 = dma.hbm_to_vmem [thread:$0]  (!%p5803_p12), %s5221_s18, 16, %s579_s28, %s569_s21  }
  0x74   : > { %s612_s2 = sshll.u32 %s605_s10, 4  ;;  %p4810_p8 = scmp.ne.s32.totalorder %s5246_s19, %s4809_s8  ;;  %s613_s2 = int_to_ptr.vmem [resolvable:$true] %s612_s2 }
  0x75   : > { %s4814_s18 = scalar_lea.hbm %s5759_s9, 48  ;;  %p4815_p3 = scmp.lt.u32.totalorder %s5246_s19, %s5759_s9 }
  0x76   : > { %p4812_p11 = pnand %p4810_p8, %p5156_p13  ;;  %p4816_p1 = scmp.lt.u32.totalorder %s4814_s18, %s4809_s8 }
  0x77   : > { %p4818_p7 = scmp.lt.u32.totalorder %s4809_s8, %s5246_s19 }
  0x78   : > { %p4813_p2 = pneg %p4812_p11  ;;  %p4817_p4 = por %p4816_p1, %p4815_p3 }
  0x7a   : > { %p4819_p10 = por %p4818_p7, %p4817_p4 }
  0x7c   : > { %p4820_p6 = pnand %p4819_p10, %p4813_p2 }
  0x7e   : > { %4823 = shalt.err (!%p4820_p6)
}
  0x7f   : > { %s4824_s15 = scalar_lea.vmem %s613_s2, 16  ;;  %s4966_s1 = smov [#allocation8]  }
  0x80   : > { %p4825_p9 = scmp.ne.s32.totalorder %s613_s2, %s4824_s15  ;;  %s4829_s25 = sshll.u32 %s4966_s1, 4  ;;  %s4830_s25 = int_to_ptr.vmem [resolvable:$false] %s4829_s25 }
  0x81   : > { %s4831_s10 = scalar_lea.vmem %s4830_s25, 32  ;;  %p4832_p8 = scmp.lt.s32.totalorder %s613_s2, %s4830_s25 }
  0x82   : > { %p4827_p5 = pnand %p4825_p9, %p5156_p13  ;;  %p4833_p11 = scmp.lt.s32.totalorder %s4831_s10, %s4824_s15 }
  0x84   : > { %p4828_p0 = pneg %p4827_p5  ;;  %p4834_p12 = por %p4833_p11, %p4832_p8 }
  0x86   : > { %p4835_p1 = pnand %p4834_p12, %p4828_p0 }
  0x88   : > { %4838 = shalt.err (!%p4835_p1)
}
  0x89   : > { %p5804_p3 = scmp.ne.s32.totalorder %s5794_s24, 0  ;;  %s5271_s11 = scalar_lea.hbm %s5762_s12, %s5130_s23 }
  0x8a   : > { %s647_s18 = scalar_lea.vmem [#allocation11], %s5127_s22  ;;  %s4839_s21 = scalar_lea.hbm %s5271_s11, 16 }
  0x8b   : > { %4481 = dma.hbm_to_vmem [thread:$0]  (!%p5804_p3), %s5246_s19, 16, %s613_s2, %s5150_s0  }
  0x8c   : > { %s654_s28 = sshll.u32 %s647_s18, 4  ;;  %p4840_p12 = scmp.ne.s32.totalorder %s5271_s11, %s4839_s21  ;;  %s655_s28 = int_to_ptr.vmem [resolvable:$true] %s654_s28 }
  0x8d   : > { %s4844_s0 = scalar_lea.hbm %s5762_s12, 48  ;;  %p4845_p7 = scmp.lt.u32.totalorder %s5271_s11, %s5762_s12 }
  0x8e   : > { %p4842_p2 = pnand %p4840_p12, %p5156_p13  ;;  %p4846_p10 = scmp.lt.u32.totalorder %s4844_s0, %s4839_s21 }
  0x8f   : > { %p4848_p9 = scmp.lt.u32.totalorder %s4839_s21, %s5271_s11 }
  0x90   : > { %p4843_p4 = pneg %p4842_p2  ;;  %p4847_p6 = por %p4846_p10, %p4845_p7 }
  0x92   : > { %p4849_p5 = por %p4848_p9, %p4847_p6 }
  0x94   : > { %p4850_p0 = pnand %p4849_p5, %p4843_p4 }
  0x96   : > { %4853 = shalt.err (!%p4850_p0)
}
  0x97   : > { %s4854_s25 = scalar_lea.vmem %s655_s28, 16  ;;  %s4967_s10 = smov [#allocation11]  }
  0x98   : > { %p4855_p8 = scmp.ne.s32.totalorder %s655_s28, %s4854_s25  ;;  %s4859_s8 = sshll.u32 %s4967_s10, 4  ;;  %s4860_s8 = int_to_ptr.vmem [resolvable:$false] %s4859_s8 }
  0x99   : > { %s4861_s13 = scalar_lea.vmem %s4860_s8, 32  ;;  %p4862_p12 = scmp.lt.s32.totalorder %s655_s28, %s4860_s8 }
  0x9a   : > { %p4857_p11 = pnand %p4855_p8, %p5156_p13  ;;  %p4863_p2 = scmp.lt.s32.totalorder %s4861_s13, %s4854_s25 }
  0x9c   : > { %p4858_p1 = pneg %p4857_p11  ;;  %p4864_p3 = por %p4863_p2, %p4862_p12 }
  0x9e   : > { %p4865_p7 = pnand %p4864_p3, %p4858_p1 }
  0xa0   : > { %4868 = shalt.err (!%p4865_p7)
}
  0xa1   : > { %p5805_p10 = scmp.ne.s32.totalorder %s5794_s24, 0  ;;  %s5296_s15 = scalar_lea.hbm %s5764_s14, %s5130_s23 }
  0xa2   : > { %s672_s1 = scalar_lea.vmem [#allocation12], %s5127_s22  ;;  %s670_s19 = scalar_lea.sflag [#allocation13], %s5127_s22 }
  0xa3   : > { %4487 = dma.hbm_to_vmem [thread:$0]  (!%p5805_p10), %s5271_s11, 16, %s655_s28, %s5197_s30  }
  0xa4   : > { %s679_s0 = sshll.u32 %s672_s1, 4  ;;  %s4869_s2 = scalar_lea.hbm %s5296_s15, 16  ;;  %s680_s0 = int_to_ptr.vmem [resolvable:$true] %s679_s0 }
  0xa5   : > { %p4870_p3 = scmp.ne.s32.totalorder %s5296_s15, %s4869_s2  ;;  %s4874_s11 = scalar_lea.hbm %s5764_s14, 48 }
  0xa6   : > { %p4875_p9 = scmp.lt.u32.totalorder %s5296_s15, %s5764_s14  ;;  %p4876_p5 = scmp.lt.u32.totalorder %s4874_s11, %s4869_s2 }
  0xa7   : > { %p4872_p4 = pnand %p4870_p3, %p5156_p13  ;;  %p4878_p8 = scmp.lt.u32.totalorder %s4869_s2, %s5296_s15 }
  0xa8   : > { %p4877_p0 = por %p4876_p5, %p4875_p9 }
  0xa9   : > { %p4873_p6 = pneg %p4872_p4 }
  0xaa   : > { %p4879_p11 = por %p4878_p8, %p4877_p0 }
  0xac   : > { %p4880_p1 = pnand %p4879_p11, %p4873_p6 }
  0xae   : > { %4883 = shalt.err (!%p4880_p1)
}
  0xaf   : > { %s4884_s22 = scalar_lea.vmem %s680_s0, 16  ;;  %s4968_s10 = smov [#allocation12]  }
  0xb0   : > { %p4885_p12 = scmp.ne.s32.totalorder %s680_s0, %s4884_s22  ;;  %s4889_s8 = sshll.u32 %s4968_s10, 4  ;;  %s4890_s8 = int_to_ptr.vmem [resolvable:$false] %s4889_s8 }
  0xb1   : > { %s4891_s13 = scalar_lea.vmem %s4890_s8, 32  ;;  %p4892_p3 = scmp.lt.s32.totalorder %s680_s0, %s4890_s8 }
  0xb2   : > { %p4887_p2 = pnand %p4885_p12, %p5156_p13  ;;  %p4893_p4 = scmp.lt.s32.totalorder %s4891_s13, %s4884_s22 }
  0xb4   : > { %p4888_p7 = pneg %p4887_p2  ;;  %p4894_p10 = por %p4893_p4, %p4892_p3 }
  0xb6   : > { %p4895_p5 = pnand %p4894_p10, %p4888_p7 }
  0xb8   : > { %4898 = shalt.err (!%p4895_p5)
}
  0xb9   : > { %p5806_p9 = scmp.ne.s32.totalorder %s5794_s24, 0  ;;  %p5807_p6 = scmp.ne.s32.totalorder %s5799_s17, 0 }
  0xba   : > { %s5320_s26 = sand.u32 (!%p5807_p6), 1, %s4945_s27   ;;  %p5808_p13 = scmp.ne.s32.totalorder (!%p5807_p6), %s5792_s20, 0 }
  0xbb   : > { %4490 = dma.hbm_to_vmem [thread:$0]  (!%p5806_p9), %s5296_s15, 16, %s680_s0, %s670_s19  }
  0xbc   : > { %688 = sbr.rel (%p5807_p6) target bundleno = 4901 (0x1325), region = 88  ;;  %s691_s18 = scalar_lea.sflag (!%p5807_p6), [#allocation5], %s5320_s26 }
  0xc3   : > { %4924 = dma.done.wait (%p5808_p13), %s691_s18, 16  }
  0xc4   : > { %4926 = vsyncadd (%p5808_p13), %s691_s18, 4294967280  ;;  %s5809_s24 = sadd.s32 4294967295, %s4961_s16  }
  0xc5   : > { %s698_s15 = sand.u32 1, %s5809_s24  }
  0xc6   : > { %s699_s17 = scalar_lea.sflag [#allocation7], %s698_s15 }
  0xc7   : > { %4928 = dma.done.wait (%p5808_p13), %s699_s17, 32  }
  0xc8   : > { %4930 = vsyncadd (%p5808_p13), %s699_s17, 4294967264  ;;  %s715_s19 = scalar_lea.sflag [#allocation10], %s698_s15 }
  0xc9   : > { %4932 = dma.done.wait (%p5808_p13), %s715_s19, 32  }
  0xca   : > { %4934 = vsyncadd (%p5808_p13), %s715_s19, 4294967264  ;;  %s731_s30 = scalar_lea.sflag [#allocation13], %s5320_s26 }
  0xcb   : > { %4936 = dma.done.wait (%p5808_p13), %s731_s30, 16  }
  0xcc   : > { %4938 = vsyncadd (%p5808_p13), %s731_s30, 4294967280  ;;  %p839_p10 = scmp.lt.s32.totalorder %s4953_s29, 2  ;;  %s5810_s25 = sld [smem:[#allocation27_spill]] }
  0xcd   : > { %s5811_s13 = sld [smem:[#allocation28_spill]]  ;;  %p3887_p0 = scmp.ne.s32.totalorder %s4953_s29, 0 }
  0xce   : > { %s5350_s28 = scalar_select %p839_p10, %s4953_s29, 2 }
  0xcf   : > { %872 = sbr.rel (%p3887_p0) target bundleno = 436 (0x1b4), region = 116  ;;  %s5812_s8 = sld [smem:[#allocation23_spill]] (!%p3887_p0)  ;;  %vm879_vm0 = vcmask (!%p3887_p0), 130048   ;;  %vm983_vm1 = vcmask (!%p3887_p0), 261120  }
  0xd0   : > { %s3982_s23 = sshll.u32 %s5350_s28, 5  ;;  %s854_s2 = scalar_lea.vmem %s5756_s6, %s5350_s28 }
  0xd1   : > { %s5360_s24 = scalar_lea.vmem %s5753_s3, %s3982_s23  ;;  %s5365_s17 = scalar_lea.vmem %s5755_s5, %s3982_s23 }
  0xd2   : > { %s5374_s1 = scalar_lea.vmem %s5810_s25, %s3982_s23  ;;  %s3985_s22 = sshll.u32 %s5350_s28, 6 }
  0xd3   : > { %s5380_s18 = scalar_lea.vmem %s5811_s13, %s3985_s22  ;;  %s5813_s11 = sld [smem:[#allocation22_spill]] (!%p3887_p0) }
  0xd4   : > { %s5814_s30 = sld [smem:[#allocation24_spill]] (!%p3887_p0) }
  0xd5   : > { %v877_v1 = vld [vmem:[%s5812_s8] sm:$0xff] (!%p3887_p0)  ;;  %v878_v2 = vld [vmem:[%s5812_s8 + $0x8] sm:$0xff] (!%p3887_p0) }
  0xd6   : > { %v4324_v4 = vpack.c.bf16 %v878_v2, %v877_v1 }
  0xd8   : > { %4325 = vmatprep.subr.bf16.mxu0 %v4324_v4  ;;  %4446 = vmatprep.subr.bf16.mxu1 %v4324_v4 }
  0xd9   : > { %v873_v3 = vld [vmem:[%s5813_s11] sm:$0xff]  ;;  %v875_v5 = vld [vmem:[%s5813_s11 + $0x10] sm:$0xff]  ;;  %4327 = vmatpush3.bf16.msra.mxu0 %v4324_v4  ;;  %4447 = vmatpush3.bf16.msra.mxu1 %v4324_v4  ;;  %v874_v6 = vld [vmem:[%s5813_s11 + $0x8] sm:$0xff] }
  0xda   : > { %4113 = vmatprep.mubr.msk.f32.mxu0 %vm879_vm0, %v873_v3  ;;  %4116 = vmatprep.mubr.msk.f32.mxu1 %vm879_vm0, %v875_v5  ;;  %v876_v7 = vld [vmem:[%s5813_s11 + $0x18] sm:$0xff]  ;;  %v978_v8 = vld [vmem:[%s5814_s30 + $0x8] sm:$0xff]  ;;  %v977_v9 = vld [vmem:[%s5814_s30] sm:$0xff] }
  0xdc   : > { %4114 = vmatmul.mubr.msk.f32.vlgmr.msra.gmra.mrb[0].mxu0 %vm879_vm0, %v874_v6  ;;  %4117 = vmatmul.mubr.msk.f32.vlgmr.msra.gmra.mrb[0].mxu1 %vm879_vm0, %v876_v7 }
 0x1af   : > { %v4115_v10 = vpop.f32.mrb[0].mxu0  ;;  %v4118_v11 = vpop.f32.mrb[0].mxu1 }
 0x1b0   : > { %v980_v12 = vadd.f32 %v4115_v10, %v978_v8  ;;  %v982_v13 = vadd.f32 %v4118_v11, %v978_v8  ;;  %v958_v14 = vpop.f32.mrb[1].mxu0  ;;  %v968_v15 = vpop.f32.mrb[1].mxu1 }
 0x1b1   : > { %v979_v16 = vadd.f32 %v977_v9, %v958_v14  ;;  %v981_v17 = vadd.f32 %v977_v9, %v968_v15 }
 0x1b2   : > { %985 = vst.msk [vmem:[#allocation2 + $0x8] sm:$0xff] %vm983_vm1, %v980_v12  ;;  %987 = vst.msk [vmem:[#allocation2 + $0x18] sm:$0xff] %vm983_vm1, %v982_v13 }
 0x1b3   : > { %984 = vst.msk [vmem:[#allocation2] sm:$0xff] %vm983_vm1, %v979_v16  ;;  %986 = vst.msk [vmem:[#allocation2 + $0x10] sm:$0xff] %vm983_vm1, %v981_v17 }
 0x1b4 PF: > { %v992_v18 = vld [vmem:[%s5360_s24] sm:$0xff]  ;;  %v993_v19 = vld [vmem:[%s5360_s24 + $0x8] sm:$0xff]  ;;  %v994_v20 = vld [vmem:[%s5360_s24 + $0x10] sm:$0xff]  ;;  %vm1003_vm2 = vcmask 261120   ;;  %vm1115_vm3 = vcmask 64512   ;;  %s4969_s22 = smov 96   ;;  %v1101_v48 = vlaneseq }
 0x1b5   : > { %v4328_v21 = vpack.c.bf16 %v993_v19, %v992_v18  ;;  %v995_v22 = vld [vmem:[%s5360_s24 + $0x18] sm:$0xff]  ;;  %s5815_s24 = scalar_lea.vmem %s5754_s4, %s5350_s28  ;;  %vm5444_vm4 = vmpackc.low %vm1115_vm3, %vm1115_vm3  ;;  %v4970_v52 = vmov -1e+30   ;;  %vm1296_vm6 = vcmask 130048   ;;  %s4971_s10 = smov 64   ;;  %vm3352_vm7 = vcmask 523264  }
 0x1b6   : > { %v4332_v24 = vpack.c.bf16 %v995_v22, %v994_v20  ;;  %v3892_v28 = vld [vmem:[%s5815_s24] ss:$0 sm:$0xff]  ;;  %v1102_v49 = vand.u32 127, %v1101_v48  ;;  %s4972_s13 = smov 88   ;;  %s4973_s20 = smov 120  }
 0x1b7   : > { %4329 = vmatprep.subr.bf16.mxu1 %v4328_v21  ;;  %s4974_s15 = smov 56   ;;  %s4975_s19 = smov 80  }
 0x1b8   : > { %4331 = vmatpush3.bf16.msra.mxu1 %v4328_v21  ;;  %vm1103_vm5 = vcmp.lt.s32.totalorder %v1102_v49, 9  ;;  %s4976_s0 = smov 112   ;;  %s4977_s25 = smov 48  }
 0x1b9   : > { %4333 = vmatprep.subr.bf16.mxu1 %v4332_v24  ;;  %v989_v25 = vld [vmem:[#allocation2 + $0x8] sm:$0xff]  ;;  %v991_v27 = vld [vmem:[#allocation2 + $0x18] sm:$0xff]  ;;  %v5460_v53 = vsel %vm1103_vm5, 0.0, %v4970_v52  ;;  %s4978_s21 = smov 72   ;;  %s4979_s23 = smov 104  }
 0x1ba   : > { %v988_v23 = vld [vmem:[#allocation2] sm:$0xff]  ;;  %v990_v26 = vld [vmem:[#allocation2 + $0x10] sm:$0xff]  ;;  %s4980_s24 = smov 40   ;;  %s5820_s28 = scalar_lea.vmem [#allocation11], %s5320_s26 }
 0x1bb   : > { %4127 = vmatprep.mubr.msk.f32.mxu1 %vm1003_vm2, %v988_v23  ;;  %p3976_p8 = scmp.ne.s32.totalorder %s4953_s29, 2 }
 0x1bc   : > { %4335 = vmatpush3.bf16.msra.mxu1 %v4332_v24  ;;  %vm4982_vm8 = vmmov (!%p3976_p8), 0   ;;  %vm3550_vm9 = vcmask (!%p3976_p8), 1041409   ;;  %vm3624_vm10 = vcmask (!%p3976_p8), 1024  }
 0x1bf   : > { %4128 = vmatmul.mubr.msk.f32.vlgmr.msra.gmra.mrb[0].mxu1 %vm1003_vm2, %v989_v25 }
 0x1c0   : > { %4130 = vmatprep.mubr.msk.f32.mxu1 %vm1003_vm2, %v990_v26 }
 0x1c3   : > { %4131 = vmatmul.mubr.msk.f32.gmra.mrb[2].mxu1 %vm1003_vm2, %v991_v27 }
 0x292   : > { %v4129_v29 = vpop.f32.mrb[0].mxu1 }
 0x293   : > { %v5420_v30 = vadd.f32 %v4129_v29, %v3892_v28  ;;  %v1082_v31 = vpop.f32.mrb[1].mxu1 }
 0x294   : > { %v5422_v32 = vadd.f32 %v3892_v28, %v1082_v31 }
 0x296   : > { %v4132_v33 = vpop.f32.mrb[2].mxu1  ;;  %4137 = vmatprep.mubr.msk.f32.mxu1 %vm1115_vm3, %v5422_v32  ;;  %v5428_v34 = vpack.i.bf16 %v5420_v30, %v5422_v32 }
 0x297   : > { %v5430_v35 = vadd.f32 %v4132_v33, %v3892_v28  ;;  %v1092_v36 = vpop.f32.mrb[3].mxu1 }
 0x298   : > { %v5432_v37 = vadd.f32 %v3892_v28, %v1092_v36  ;;  %4556 = vrot.lane.b32.xlu0 %v5428_v34, %s4969_s22 }
 0x29a   : > { %v5437_v38 = vpack.i.bf16 %v5430_v35, %v5432_v37  ;;  %4144 = vmatprep.mubr.msk.f32.mxu0 %vm1115_vm3, %v5432_v37 }
 0x29c   : > { %4561 = vrot.lane.b32.xlu0 %v5437_v38, %s4969_s22 }
 0x30a   : > { %v4557_v39 = vpop.permute.xlu0 %4556 }
 0x30b   : > { %v4559_v40 = vunpack.i.h.bf16 %v4557_v39  ;;  %v4558_v41 = vunpack.i.l.bf16 %v4557_v39 }
 0x30d   : > { %v4336_v43 = vpack.c.bf16 %v4559_v40, %v4558_v41 }
 0x30e   : > { %v4562_v44 = vpop.permute.xlu0 %4561 }
 0x30f   : > { %v4564_v45 = vunpack.i.h.bf16 %v4562_v44  ;;  %v4563_v46 = vunpack.i.l.bf16 %v4562_v44  ;;  %4338 = vmatprep.subr.msk.bf16.mxu1 %vm5444_vm4, %v4336_v43 }
 0x310   : > { %4341 = vmatpush3.bf16.xpose.msk.msra.mxu1 %vm5444_vm4, %v4336_v43 }
 0x311   : > { %v4342_v47 = vpack.c.bf16 %v4564_v45, %v4563_v46 }
 0x313   : > { %4344 = vmatprep.subr.msk.bf16.mxu0 %vm5444_vm4, %v4342_v47 }
 0x314   : > { %4347 = vmatpush3.bf16.xpose.msk.msra.mxu0 %vm5444_vm4, %v4342_v47 }
 0x317   : > { %4138 = vmatmul.mubr.msk.f32.vlgmr.msra.gmra.mrb[4].mxu1 %vm1115_vm3, %v5420_v30 }
 0x31b   : > { %4145 = vmatmul.mubr.msk.f32.vlgmr.msra.gmra.mrb[0].mxu0 %vm1115_vm3, %v5430_v35 }
 0x3ea   : > { %v4139_v50 = vpop.f32.mrb[4].mxu1 }
 0x3eb   : > { %v1190_v51 = vpop.f32.mrb[5].mxu1  ;;  %v1289_v54 = vmul.f32 0.35355338, %v4139_v50 }
 0x3ec   : > { %v1288_v55 = vmul.f32 0.35355338, %v1190_v51 }
 0x3ed   : > { %v1293_v62 = vadd.f32 %v1289_v54, %v5460_v53 }
 0x3ee   : > { %v4146_v56 = vpop.f32.mrb[0].mxu0  ;;  %v1292_v57 = vadd.f32 %v1288_v55, %v5460_v53 }
 0x3ef   : > { %v1279_v58 = vpop.f32.mrb[1].mxu0  ;;  %v1291_v59 = vmul.f32 0.35355338, %v4146_v56  ;;  %v1300_v1 = vsel %vm1296_vm6, %v1293_v62, -inf }
 0x3f0   : > { %v1290_v60 = vmul.f32 0.35355338, %v1279_v58  ;;  %v1297_v61 = vsel %vm1296_vm6, %v1292_v57, -inf }
 0x3f1   : > { %1298 = vmax.xlane.f32.xlu1 %v1297_v61  ;;  %v1295_v2 = vadd.f32 %v1291_v59, %v5460_v53 }
 0x3f2   : > { %v1294_v63 = vadd.f32 %v1290_v60, %v5460_v53 }
 0x3f3   : > { %v1306_v3 = vsel %vm1296_vm6, %v1295_v2, -inf }
 0x3f4   : > { %v1303_v0 = vsel %vm1296_vm6, %v1294_v63, -inf }
 0x3f5   : > { %1304 = vmax.xlane.f32.xlu0 %v1303_v0  ;;  %1301 = vmax.xlane.f32.xlu1 %v1300_v1 }
 0x3f9   : > { %1307 = vmax.xlane.f32.xlu1 %v1306_v3 }
 0x40a   : > { %4566 = vrot.lane.b32.xlu1 %v5428_v34, %s4971_s10 }
 0x40b   : > { %4571 = vrot.lane.b32.xlu0 %v5437_v38, %s4971_s10  ;;  %s5825_s10 = sld [smem:[#allocation30_spill]] (!%p3976_p8) }
 0x40e   : > { %4576 = vrot.lane.b32.xlu1 %v5437_v38, %s4972_s13 }
 0x40f   : > { %1515 = vrot.lane.b32.xlu0 %v5422_v32, %s4973_s20 }
 0x412   : > { %1606 = vrot.lane.b32.xlu1 %v5432_v37, %s4973_s20 }
 0x47e   : > { %v1299_v4 = vpop.xlane.xlu1 %1298 }
 0x47f   : > { %v1309_v5 = vsub.f32 %v1292_v57, %v1299_v4 }
 0x481   : > { %v1313_v10 = vmul.f32 1.442695, %v1309_v5 }
 0x482   : > { %v1305_v6 = vpop.xlane.xlu0 %1304  ;;  %v1302_v7 = vpop.xlane.xlu1 %1301 }
 0x483   : > { %v1310_v8 = vsub.f32 %v1293_v62, %v1302_v7  ;;  %v1311_v14 = vsub.f32 %v1294_v63, %v1305_v6 }
 0x485   : > { %v1315_v9 = vmul.f32 1.442695, %v1310_v8  ;;  %v1317_v23 = vmul.f32 1.442695, %v1311_v14 }
 0x486   : > { %v4572_v11 = vpop.permute.xlu0 %4571  ;;  %v1308_v12 = vpop.xlane.xlu1 %1307 }
 0x487   : > { %v1312_v13 = vsub.f32 %v1295_v2, %v1308_v12  ;;  %4635 = vpow2.f32 %v1315_v9  ;;  %v4574_v18 = vunpack.i.h.bf16 %v4572_v11  ;;  %v4573_v19 = vunpack.i.l.bf16 %v4572_v11 }
 0x488   : > { %4637 = vpow2.f32 %v1313_v10 }
 0x489   : > { %v1319_v15 = vmul.f32 1.442695, %v1312_v13  ;;  %v4352_v24 = vpack.c.bf16 %v4574_v18, %v4573_v19 }
 0x48a   : > { %v1516_v16 = vpop.permute.xlu0 %1515  ;;  %v4567_v17 = vpop.permute.xlu1 %4566 }
 0x48b   : > { %v4569_v20 = vunpack.i.h.bf16 %v4567_v17  ;;  %v4568_v21 = vunpack.i.l.bf16 %v4567_v17  ;;  %4165 = vmatprep.mubr.msk.f32.mxu0 %vm1115_vm3, %v1516_v16  ;;  %4639 = vpow2.f32 %v1319_v15 }
 0x48c   : > { %4641 = vpow2.f32 %v1317_v23 }
 0x48d   : > { %v4348_v22 = vpack.c.bf16 %v4569_v20, %v4568_v21 }
 0x48e   : > { %v4577_v39 = vpop.permute.xlu1 %4576 }
 0x48f   : > { %4349 = vmatprep.subr.bf16.mxu1 %v4348_v22  ;;  %v4579_v48 = vunpack.i.h.bf16 %v4577_v39  ;;  %v4578_v49 = vunpack.i.l.bf16 %v4577_v39 }
 0x490   : > { %4351 = vmatpush3.bf16.msra.mxu1 %v4348_v22 }
 0x491   : > { %4353 = vmatprep.subr.bf16.mxu1 %v4352_v24  ;;  %v4636_v25 = vpop.eup %4635  ;;  %v4362_v54 = vpack.c.bf16 %v4579_v48, %v4578_v49 }
 0x492   : > { %v1324_v26 = vsel %vm1296_vm6, %v4636_v25, 0.0  ;;  %v4638_v27 = vpop.eup %4637  ;;  %v1607_v40 = vpop.permute.xlu1 %1606 }
 0x493   : > { %1325 = vadd.xlane.f32.xlu1 %v1324_v26  ;;  %v1321_v28 = vsel %vm1296_vm6, %v4638_v27, 0.0 }
 0x495   : > { %v4640_v29 = vpop.eup %4639 }
 0x496   : > { %v1330_v31 = vsel %vm1296_vm6, %v4640_v29, 0.0  ;;  %v4642_v33 = vpop.eup %4641 }
 0x497   : > { %1322 = vadd.xlane.f32.xlu1 %v1321_v28  ;;  %v1327_v36 = vsel %vm1296_vm6, %v4642_v33, 0.0 }
 0x49b   : > { %1331 = vadd.xlane.f32.xlu1 %v1330_v31 }
 0x49f   : > { %1328 = vadd.xlane.f32.xlu1 %v1327_v36 }
 0x4b0   : > { %1608 = vrot.lane.b32.xlu1 %v5430_v35, %s4973_s20 }
 0x4b4   : > { %4581 = vrot.lane.b32.xlu1 %v5428_v34, %s4972_s13  ;;  %s5823_s13 = scalar_lea.vmem [#allocation9], %s5320_s26 }
 0x4b8   : > { %1517 = vrot.lane.b32.xlu1 %v5420_v30, %s4973_s20 }
 0x520   : > { %v1326_v41 = vpop.xlane.xlu1 %1325 }
 0x521   : > { %4643 = vrcp.f32 %v1326_v41 }
 0x524   : > { %v1323_v43 = vpop.xlane.xlu1 %1322 }
 0x525   : > { %4645 = vrcp.f32 %v1323_v43 }
 0x528   : > { %v1332_v44 = vpop.xlane.xlu1 %1331 }
 0x529   : > { %4647 = vrcp.f32 %v1332_v44 }
 0x52b   : > { %v4644_v46 = vpop.eup %4643 }
 0x52c   : > { %v1329_v45 = vpop.xlane.xlu1 %1328  ;;  %v1336_v52 = vmul.f32 %v4644_v46, %v4636_v25 }
 0x52d   : > { %4649 = vrcp.f32 %v1329_v45 }
 0x52f   : > { %v4646_v47 = vpop.eup %4645 }
 0x530   : > { %v1609_v50 = vpop.permute.xlu1 %1608  ;;  %v1334_v51 = vmul.f32 %v4646_v47, %v4638_v27 }
 0x532   : > { %4151 = vmatprep.mubr.msk.f32.mxu1 %vm1296_vm6, %v1334_v51 }
 0x533   : > { %4152 = vmatmul.mubr.msk.f32.vlgmr.msra.gmra.mrb[6].mxu1 %vm1296_vm6, %v1336_v52  ;;  %v4648_v58 = vpop.eup %4647 }
 0x534   : > { %4355 = vmatpush3.bf16.msra.mxu1 %v4352_v24  ;;  %v4582_v55 = vpop.permute.xlu1 %4581  ;;  %v1340_v62 = vmul.f32 %v4648_v58, %v4640_v29 }
 0x535   : > { %v4584_v56 = vunpack.i.h.bf16 %v4582_v55  ;;  %v4583_v57 = vunpack.i.l.bf16 %v4582_v55  ;;  %4364 = vmatprep.subr.msk.bf16.mxu1 %vm5444_vm4, %v4362_v54 }
 0x537   : > { %v4650_v59 = vpop.eup %4649  ;;  %v4356_v60 = vpack.c.bf16 %v4584_v56, %v4583_v57 }
 0x538   : > { %v1338_v61 = vmul.f32 %v4650_v59, %v4642_v33  ;;  %v1518_v63 = vpop.permute.xlu1 %1517 }
 0x539   : > { %4358 = vmatprep.subr.msk.bf16.mxu0 %vm5444_vm4, %v4356_v60 }
 0x53a   : > { %4158 = vmatprep.mubr.msk.f32.mxu1 %vm1296_vm6, %v1338_v61  ;;  %4361 = vmatpush3.bf16.xpose.msk.msra.mxu0 %vm5444_vm4, %v4356_v60 }
 0x53b   : > { %4159 = vmatmul.mubr.msk.f32.vlgmr.msra.gmra.mrb[8].mxu1 %vm1296_vm6, %v1340_v62 }
 0x53c   : > { %4172 = vmatprep.mubr.msk.f32.mxu1 %vm1115_vm3, %v1607_v40 }
 0x53d   : > { %4367 = vmatpush3.bf16.xpose.msk.msra.mxu1 %vm5444_vm4, %v4362_v54 }
 0x541   : > { %4166 = vmatmul.mubr.msk.f32.vlgmr.msra.gmra.mrb[2].mxu0 %vm1115_vm3, %v1518_v63 }
 0x544   : > { %4173 = vmatmul.mubr.msk.f32.vlgmr.msra.gmra.mrb[10].mxu1 %vm1115_vm3, %v1609_v50 }
 0x606   : > { %v5504_v0 = vpop.f32.mrb[6].mxu1 }
 0x607   : > { %v5506_v1 = vpop.f32.mrb[7].mxu1 }
 0x60e   : > { %v5508_v2 = vpop.f32.mrb[8].mxu1 }
 0x60f   : > { %v5510_v3 = vpop.f32.mrb[9].mxu1 }
 0x614   : > { %v4167_v4 = vpop.f32.mrb[2].mxu0 }
 0x615   : > { %v1597_v5 = vpop.f32.mrb[3].mxu0  ;;  %v1698_v44 = vmul.f32 0.35355338, %v4167_v4 }
 0x616   : > { %v1697_v14 = vmul.f32 0.35355338, %v1597_v5 }
 0x617   : > { %v4174_v6 = vpop.f32.mrb[10].mxu1  ;;  %v1702_v45 = vadd.f32 %v1698_v44, %v5460_v53 }
 0x618   : > { %v1700_v7 = vmul.f32 0.35355338, %v4174_v6  ;;  %v1688_v8 = vpop.f32.mrb[11].mxu1  ;;  %v1701_v15 = vadd.f32 %v1697_v14, %v5460_v53 }
 0x619   : > { %v1699_v9 = vmul.f32 0.35355338, %v1688_v8  ;;  %v1708_v46 = vsel %vm1296_vm6, %v1702_v45, -inf }
 0x61a   : > { %v1704_v10 = vadd.f32 %v1700_v7, %v5460_v53  ;;  %v1705_v16 = vsel %vm1296_vm6, %v1701_v15, -inf }
 0x61b   : > { %v1703_v11 = vadd.f32 %v1699_v9, %v5460_v53 }
 0x61c   : > { %v1714_v12 = vsel %vm1296_vm6, %v1704_v10, -inf }
 0x61d   : > { %1715 = vmax.xlane.f32.xlu1 %v1714_v12  ;;  %v1711_v13 = vsel %vm1296_vm6, %v1703_v11, -inf }
 0x61e   : > { %1712 = vmax.xlane.f32.xlu0 %v1711_v13 }
 0x62e   : > { %4586 = vrot.lane.b32.xlu1 %v5437_v38, %s4974_s15 }
 0x632   : > { %4596 = vrot.lane.b32.xlu1 %v5437_v38, %s4975_s19 }
 0x636   : > { %2117 = vrot.lane.b32.xlu1 %v5422_v32, %s4976_s0 }
 0x63a   : > { %2208 = vrot.lane.b32.xlu1 %v5432_v37, %s4976_s0 }
 0x65e   : > { %1706 = vmax.xlane.f32.xlu1 %v1705_v16 }
 0x6aa   : > { %v1716_v17 = vpop.xlane.xlu1 %1715 }
 0x6ab   : > { %v1720_v18 = vsub.f32 %v1704_v10, %v1716_v17  ;;  %v1713_v19 = vpop.xlane.xlu0 %1712 }
 0x6ac   : > { %v1719_v20 = vsub.f32 %v1703_v11, %v1713_v19 }
 0x6ad   : > { %v1727_v21 = vmul.f32 1.442695, %v1720_v18 }
 0x6ae   : > { %v1725_v22 = vmul.f32 1.442695, %v1719_v20  ;;  %v4587_v23 = vpop.permute.xlu1 %4586 }
 0x6af   : > { %4651 = vpow2.f32 %v1727_v21  ;;  %v4589_v24 = vunpack.i.h.bf16 %v4587_v23  ;;  %v4588_v25 = vunpack.i.l.bf16 %v4587_v23 }
 0x6b0   : > { %4653 = vpow2.f32 %v1725_v22 }
 0x6b1   : > { %v4372_v26 = vpack.c.bf16 %v4589_v24, %v4588_v25 }
 0x6b2   : > { %v4597_v33 = vpop.permute.xlu1 %4596 }
 0x6b3   : > { %4373 = vmatprep.subr.bf16.mxu1 %v4372_v26  ;;  %v4599_v58 = vunpack.i.h.bf16 %v4597_v33  ;;  %v4598_v59 = vunpack.i.l.bf16 %v4597_v33 }
 0x6b4   : > { %4375 = vmatpush3.bf16.msra.mxu1 %v4372_v26 }
 0x6b5   : > { %v4382_v62 = vpack.c.bf16 %v4599_v58, %v4598_v59 }
 0x6b6   : > { %v2118_v36 = vpop.permute.xlu1 %2117 }
 0x6b9   : > { %v4652_v27 = vpop.eup %4651 }
 0x6ba   : > { %v1738_v28 = vsel %vm1296_vm6, %v4652_v27, 0.0  ;;  %v4654_v29 = vpop.eup %4653  ;;  %v2209_v39 = vpop.permute.xlu1 %2208 }
 0x6bb   : > { %1739 = vadd.xlane.f32.xlu0 %v1738_v28  ;;  %v1735_v31 = vsel %vm1296_vm6, %v4654_v29, 0.0 }
 0x6bf   : > { %1736 = vadd.xlane.f32.xlu0 %v1735_v31 }
 0x6d5   : > { %4591 = vrot.lane.b32.xlu0 %v5428_v34, %s4975_s19 }
 0x6d9   : > { %2119 = vrot.lane.b32.xlu0 %v5420_v30, %s4976_s0 }
 0x6dd   : > { %2210 = vrot.lane.b32.xlu0 %v5430_v35, %s4976_s0 }
 0x6eb   : > { %v1707_v40 = vpop.xlane.xlu1 %1706 }
 0x6ec   : > { %v1717_v41 = vsub.f32 %v1701_v15, %v1707_v40 }
 0x6ee   : > { %v1721_v43 = vmul.f32 1.442695, %v1717_v41 }
 0x6f0   : > { %4655 = vpow2.f32 %v1721_v43 }
 0x6fa   : > { %v4656_v47 = vpop.eup %4655 }
 0x6fb   : > { %v1729_v48 = vsel %vm1296_vm6, %v4656_v47, 0.0 }
 0x6fc   : > { %1709 = vmax.xlane.f32.xlu0 %v1708_v46  ;;  %v1105_v46 = vld [vmem:[%s5365_s17] sm:$0xff] }
 0x700   : > { %1730 = vadd.xlane.f32.xlu0 %v1729_v48 }
 0x716   : > { %4601 = vrot.lane.b32.xlu0 %v5428_v34, %s4974_s15  ;;  %s5824_s15 = sld [smem:[#allocation29_spill]] (!%p3976_p8) }
 0x748   : > { %v1740_v49 = vpop.xlane.xlu0 %1739 }
 0x749   : > { %4657 = vrcp.f32 %v1740_v49 }
 0x74c   : > { %v1737_v50 = vpop.xlane.xlu0 %1736 }
 0x74d   : > { %4659 = vrcp.f32 %v1737_v50 }
 0x750   : > { %v4592_v51 = vpop.permute.xlu0 %4591 }
 0x751   : > { %v4594_v52 = vunpack.i.h.bf16 %v4592_v51  ;;  %v4593_v54 = vunpack.i.l.bf16 %v4592_v51 }
 0x753   : > { %v4376_v55 = vpack.c.bf16 %v4594_v52, %v4593_v54  ;;  %v4658_v56 = vpop.eup %4657 }
 0x754   : > { %v1748_v61 = vmul.f32 %v4658_v56, %v4652_v27  ;;  %v2120_v63 = vpop.permute.xlu0 %2119 }
 0x755   : > { %4378 = vmatprep.subr.msk.bf16.mxu1 %vm5444_vm4, %v4376_v55 }
 0x757   : > { %v4660_v57 = vpop.eup %4659 }
 0x758   : > { %v1746_v60 = vmul.f32 %v4660_v57, %v4654_v29  ;;  %v2211_v4 = vpop.permute.xlu0 %2210 }
 0x75a   : > { %4186 = vmatprep.mubr.msk.f32.mxu1 %vm1296_vm6, %v1746_v60 }
 0x75b   : > { %4187 = vmatmul.mubr.msk.f32.vlgmr.msra.gmra.mrb[12].mxu1 %vm1296_vm6, %v1748_v61 }
 0x75c   : > { %4381 = vmatpush3.bf16.xpose.msk.msra.mxu1 %vm5444_vm4, %v4376_v55  ;;  %4209 = vmatprep.mubr.msk.f32.mxu1 %vm1115_vm3, %v2118_v36 }
 0x75d   : > { %4384 = vmatprep.subr.msk.bf16.mxu1 %vm5444_vm4, %v4382_v62 }
 0x763   : > { %4210 = vmatmul.mubr.msk.f32.vlgmr.msra.gmra.mrb[14].mxu1 %vm1115_vm3, %v2120_v63 }
 0x764   : > { %4387 = vmatpush3.bf16.xpose.msk.msra.mxu1 %vm5444_vm4, %v4382_v62  ;;  %4216 = vmatprep.mubr.msk.f32.mxu1 %vm1115_vm3, %v2209_v39 }
 0x76b   : > { %4217 = vmatmul.mubr.msk.f32.vlgmr.msra.gmra.mrb[16].mxu1 %vm1115_vm3, %v2211_v4 }
 0x789   : > { %v1710_v5 = vpop.xlane.xlu0 %1709 }
 0x78a   : > { %v1718_v6 = vsub.f32 %v1702_v45, %v1710_v5  ;;  %v1106_v45 = vld [vmem:[%s5365_s17 + $0x8] sm:$0xff] }
 0x78c   : > { %v1723_v7 = vmul.f32 1.442695, %v1718_v6 }
 0x78d   : > { %v1731_v8 = vpop.xlane.xlu0 %1730 }
 0x78e   : > { %4661 = vpow2.f32 %v1723_v7 }
 0x78f   : > { %4663 = vrcp.f32 %v1731_v8 }
 0x791   : > { %v4602_v9 = vpop.permute.xlu0 %4601 }
 0x792   : > { %v4604_v10 = vunpack.i.h.bf16 %v4602_v9  ;;  %v4603_v11 = vunpack.i.l.bf16 %v4602_v9 }
 0x794   : > { %v4368_v12 = vpack.c.bf16 %v4604_v10, %v4603_v11 }
 0x796   : > { %4369 = vmatprep.subr.bf16.mxu0 %v4368_v12 }
 0x797   : > { %4371 = vmatpush3.bf16.msra.mxu0 %v4368_v12 }
 0x798   : > { %v4662_v13 = vpop.eup %4661  ;;  %4189 = vmatprep.subr.mxu0 %v1106_v45 }
 0x799   : > { %v4664_v14 = vpop.eup %4663  ;;  %v1732_v15 = vsel %vm1296_vm6, %v4662_v13, 0.0 }
 0x79a   : > { %1733 = vadd.xlane.f32.xlu1 %v1732_v15  ;;  %v1742_v16 = vmul.f32 %v4664_v14, %v4656_v47 }
 0x79c   : > { %4179 = vmatprep.mubr.msk.f32.mxu0 %vm1296_vm6, %v1742_v16 }
 0x827   : > { %v1734_v17 = vpop.xlane.xlu1 %1733 }
 0x828   : > { %4665 = vrcp.f32 %v1734_v17  ;;  %v1107_v17 = vld [vmem:[%s5365_s17 + $0x10] sm:$0xff] }
 0x82e   : > { %v5549_v18 = vpop.f32.mrb[12].mxu1 }
 0x82f   : > { %v5551_v19 = vpop.f32.mrb[13].mxu1 }
 0x832   : > { %v4666_v20 = vpop.eup %4665 }
 0x833   : > { %v1744_v21 = vmul.f32 %v4666_v20, %v4662_v13 }
 0x835   : > { %4180 = vmatmul.mubr.msk.f32.vlgmr.msra.gmra.mrb[4].mxu0 %vm1296_vm6, %v1744_v21 }
 0x836   : > { %v4211_v22 = vpop.f32.mrb[14].mxu1  ;;  %4190 = vmatpush3.msra.mxu0 %v1106_v45 }
 0x837   : > { %v2300_v23 = vmul.f32 0.35355338, %v4211_v22  ;;  %v2199_v24 = vpop.f32.mrb[15].mxu1  ;;  %4197 = vmatprep.subr.mxu0 %v1105_v46 }
 0x838   : > { %v2299_v25 = vmul.f32 0.35355338, %v2199_v24 }
 0x839   : > { %v2304_v26 = vadd.f32 %v2300_v23, %v5460_v53 }
 0x83a   : > { %v2303_v28 = vadd.f32 %v2299_v25, %v5460_v53 }
 0x83b   : > { %v2310_v27 = vsel %vm1296_vm6, %v2304_v26, -inf }
 0x83c   : > { %2311 = vmax.xlane.f32.xlu1 %v2310_v27  ;;  %v2307_v33 = vsel %vm1296_vm6, %v2303_v28, -inf }
 0x83e   : > { %v4218_v29 = vpop.f32.mrb[16].mxu1 }
 0x83f   : > { %v2290_v31 = vpop.f32.mrb[17].mxu1  ;;  %v2302_v36 = vmul.f32 0.35355338, %v4218_v29 }
 0x840   : > { %v2301_v39 = vmul.f32 0.35355338, %v2290_v31  ;;  %2308 = vmax.xlane.f32.xlu1 %v2307_v33 }
 0x841   : > { %v2306_v43 = vadd.f32 %v2302_v36, %v5460_v53 }
 0x842   : > { %v2305_v40 = vadd.f32 %v2301_v39, %v5460_v53 }
 0x843   : > { %v2316_v44 = vsel %vm1296_vm6, %v2306_v43, -inf }
 0x844   : > { %v2313_v41 = vsel %vm1296_vm6, %v2305_v40, -inf }
 0x845   : > { %2314 = vmax.xlane.f32.xlu1 %v2313_v41 }
 0x849   : > { %2317 = vmax.xlane.f32.xlu1 %v2316_v44 }
 0x8c9   : > { %v2312_v47 = vpop.xlane.xlu1 %2311 }
 0x8ca   : > { %v2320_v48 = vsub.f32 %v2304_v26, %v2312_v47 }
 0x8cc   : > { %v2325_v49 = vmul.f32 1.442695, %v2320_v48 }
 0x8cd   : > { %v2309_v50 = vpop.xlane.xlu1 %2308 }
 0x8ce   : > { %4667 = vpow2.f32 %v2325_v49  ;;  %v2319_v51 = vsub.f32 %v2303_v28, %v2309_v50 }
 0x8d0   : > { %v2323_v52 = vmul.f32 1.442695, %v2319_v51 }
 0x8d2   : > { %4669 = vpow2.f32 %v2323_v52  ;;  %v2315_v54 = vpop.xlane.xlu1 %2314 }
 0x8d3   : > { %v2321_v55 = vsub.f32 %v2305_v40, %v2315_v54 }
 0x8d5   : > { %v2327_v56 = vmul.f32 1.442695, %v2321_v55 }
 0x8d6   : > { %v2318_v57 = vpop.xlane.xlu1 %2317 }
 0x8d7   : > { %4671 = vpow2.f32 %v2327_v56  ;;  %v2322_v58 = vsub.f32 %v2306_v43, %v2318_v57 }
 0x8d8   : > { %v5564_v59 = vpop.eup %4667 }
 0x8d9   : > { %v2329_v60 = vmul.f32 1.442695, %v2322_v58  ;;  %v2334_v61 = vsel %vm1296_vm6, %v5564_v59, 0.0 }
 0x8da   : > { %2335 = vadd.xlane.f32.xlu1 %v2334_v61 }
 0x8db   : > { %4673 = vpow2.f32 %v2329_v60 }
 0x8dc   : > { %v4670_v62 = vpop.eup %4669 }
 0x8dd   : > { %v2331_v63 = vsel %vm1296_vm6, %v4670_v62, 0.0 }
 0x8de   : > { %2332 = vadd.xlane.f32.xlu1 %v2331_v63 }
 0x8e1   : > { %v4672_v4 = vpop.eup %4671 }
 0x8e2   : > { %v2337_v5 = vsel %vm1296_vm6, %v4672_v4, 0.0 }
 0x8e3   : > { %2338 = vadd.xlane.f32.xlu0 %v2337_v5 }
 0x8e5   : > { %v5570_v6 = vpop.eup %4673 }
 0x8e6   : > { %v2340_v7 = vsel %vm1296_vm6, %v5570_v6, 0.0 }
 0x8e7   : > { %2341 = vadd.xlane.f32.xlu1 %v2340_v7 }
 0x8f8   : > { %4606 = vrot.lane.b32.xlu1 %v5428_v34, %s4977_s25 }
 0x8f9   : > { %4621 = vrot.lane.b32.xlu0 %v5437_v38, %s4978_s21 }
 0x8fc   : > { %4611 = vrot.lane.b32.xlu1 %v5437_v38, %s4977_s25 }
 0x900   : > { %4616 = vrot.lane.b32.xlu1 %v5428_v34, %s4978_s21 }
 0x904   : > { %2626 = vrot.lane.b32.xlu1 %v5422_v32, %s4979_s23 }
 0x908   : > { %2628 = vrot.lane.b32.xlu1 %v5420_v30, %s4979_s23  ;;  %v4181_v8 = vpop.f32.mrb[4].mxu0 }
 0x909   : > { %v1827_v9 = vpop.f32.mrb[5].mxu0 }
 0x90a   : > { %4191 = vmatprep.mubr.msk.f32.mxu0 %vm1115_vm3, %v1827_v9 }
 0x90b   : > { %4192 = vmatmul.mubr.msk.f32.vlgmr.msra.gmra.mrb[6].mxu0 %vm1115_vm3, %v4181_v8 }
 0x90c   : > { %2717 = vrot.lane.b32.xlu1 %v5432_v37, %s4979_s23  ;;  %4194 = vmatprep.mubr.msk.f32.mxu0 %vm1115_vm3, %v5551_v19 }
 0x90d   : > { %4198 = vmatpush3.msra.mxu0 %v1105_v46 }
 0x90f   : > { %4195 = vmatmul.mubr.msk.f32.gmra.mrb[8].mxu0 %vm1115_vm3, %v5549_v18 }
 0x910   : > { %2719 = vrot.lane.b32.xlu1 %v5430_v35, %s4979_s23  ;;  %4199 = vmatprep.mubr.msk.f32.mxu0 %vm1115_vm3, %v5506_v1 }
 0x913   : > { %4200 = vmatmul.mubr.msk.f32.vlgmr.msra.gmra.mrb[6].mxu0 %vm1115_vm3, %v5504_v0 }
 0x914   : > { %4202 = vmatprep.mubr.msk.f32.mxu0 %vm1115_vm3, %v5510_v3 }
 0x917   : > { %4203 = vmatmul.mubr.msk.f32.gmra.mrb[8].mxu0 %vm1115_vm3, %v5508_v2 }
 0x967   : > { %v2336_v30 = vpop.xlane.xlu1 %2335 }
 0x96b   : > { %v2333_v32 = vpop.xlane.xlu1 %2332 }
 0x96c   : > { %4675 = vrcp.f32 %v2333_v32 }
 0x970   : > { %v2339_v37 = vpop.xlane.xlu0 %2338 }
 0x971   : > { %4677 = vrcp.f32 %v2339_v37 }
 0x972   : > { %4679 = vrcp.f32 %v2336_v30 }
 0x974   : > { %v2342_v35 = vpop.xlane.xlu1 %2341  ;;  %v4622_v3 = vpop.permute.xlu0 %4621 }
 0x975   : > { %4681 = vrcp.f32 %v2342_v35  ;;  %v4624_v18 = vunpack.i.h.bf16 %v4622_v3  ;;  %v4623_v19 = vunpack.i.l.bf16 %v4622_v3 }
 0x976   : > { %v4676_v10 = vpop.eup %4675 }
 0x977   : > { %v2344_v1 = vmul.f32 %v4676_v10, %v4670_v62  ;;  %v4402_v26 = vpack.c.bf16 %v4624_v18, %v4623_v19 }
 0x978   : > { %v4607_v11 = vpop.permute.xlu1 %4606 }
 0x979   : > { %v4609_v12 = vunpack.i.h.bf16 %v4607_v11  ;;  %v4608_v0 = vunpack.i.l.bf16 %v4607_v11  ;;  %4223 = vmatprep.mubr.msk.f32.mxu0 %vm1296_vm6, %v2344_v1 }
 0x97b   : > { %v4678_v13 = vpop.eup %4677  ;;  %v4388_v14 = vpack.c.bf16 %v4609_v12, %v4608_v0 }
 0x97c   : > { %v4680_v2 = vpop.eup %4679  ;;  %v4612_v15 = vpop.permute.xlu1 %4611  ;;  %v2348_v16 = vmul.f32 %v4678_v13, %v4672_v4 }
 0x97d   : > { %v4614_v20 = vunpack.i.h.bf16 %v4612_v15  ;;  %v4613_v21 = vunpack.i.l.bf16 %v4612_v15  ;;  %4389 = vmatprep.subr.bf16.mxu0 %v4388_v14  ;;  %v2346_v22 = vmul.f32 %v4680_v2, %v5564_v59 }
 0x97e   : > { %4391 = vmatpush3.bf16.msra.mxu0 %v4388_v14  ;;  %4230 = vmatprep.mubr.msk.f32.mxu1 %vm1296_vm6, %v2348_v16 }
 0x97f   : > { %v4392_v23 = vpack.c.bf16 %v4614_v20, %v4613_v21  ;;  %4233 = vmatprep.subr.mxu0 %v1107_v17  ;;  %v4682_v24 = vpop.eup %4681 }
 0x980   : > { %v4617_v25 = vpop.permute.xlu1 %4616  ;;  %v2350_v29 = vmul.f32 %v4682_v24, %v5570_v6 }
 0x981   : > { %v4619_v27 = vunpack.i.h.bf16 %v4617_v25  ;;  %v4618_v28 = vunpack.i.l.bf16 %v4617_v25  ;;  %4224 = vmatmul.mubr.msk.f32.vlgmr.msra.gmra.mrb[10].mxu0 %vm1296_vm6, %v2346_v22  ;;  %4393 = vmatprep.subr.bf16.mxu1 %v4392_v23 }
 0x982   : > { %4395 = vmatpush3.bf16.msra.mxu1 %v4392_v23  ;;  %4234 = vmatpush3.msra.mxu0 %v1107_v17 }
 0x983   : > { %v4396_v31 = vpack.c.bf16 %v4619_v27, %v4618_v28  ;;  %4404 = vmatprep.subr.msk.bf16.mxu0 %vm5444_vm4, %v4402_v26 }
 0x984   : > { %v2627_v33 = vpop.permute.xlu1 %2626 }
 0x985   : > { %4231 = vmatmul.mubr.msk.f32.vlgmr.msra.gmra.mrb[18].mxu1 %vm1296_vm6, %v2350_v29  ;;  %4398 = vmatprep.subr.msk.bf16.mxu1 %vm5444_vm4, %v4396_v31 }
 0x986   : > { %4245 = vmatprep.mubr.msk.f32.mxu1 %vm1115_vm3, %v2627_v33  ;;  %v1108_v33 = vld [vmem:[%s5365_s17 + $0x18] sm:$0xff]  ;;  %s5821_s17 = scalar_lea.vmem [#allocation12], %s5320_s26 }
 0x988   : > { %v2629_v36 = vpop.permute.xlu1 %2628 }
 0x98b   : > { %4401 = vmatpush3.bf16.xpose.msk.msra.mxu1 %vm5444_vm4, %v4396_v31 }
 0x98c   : > { %v2718_v41 = vpop.permute.xlu1 %2717 }
 0x990   : > { %v2720_v45 = vpop.permute.xlu1 %2719 }
 0x992   : > { %4246 = vmatmul.mubr.msk.f32.vlgmr.msra.gmra.mrb[20].mxu1 %vm1115_vm3, %v2629_v36 }
 0xa54   : > { %v4225_v39 = vpop.f32.mrb[10].mxu0 }
 0xa55   : > { %v2429_v40 = vpop.f32.mrb[11].mxu0 }
 0xa56   : > { %4235 = vmatprep.mubr.msk.f32.mxu0 %vm1115_vm3, %v2429_v40 }
 0xa57   : > { %4236 = vmatmul.mubr.msk.f32.vlgmr.msra.gmra.mrb[6].mxu0 %vm1115_vm3, %v4225_v39 }
 0xa58   : > { %4407 = vmatpush3.bf16.xpose.msk.msra.mxu0 %vm5444_vm4, %v4402_v26  ;;  %v4232_v43 = vpop.f32.mrb[18].mxu1 }
 0xa59   : > { %v2516_v44 = vpop.f32.mrb[19].mxu1 }
 0xa5a   : > { %4238 = vmatprep.mubr.msk.f32.mxu0 %vm1115_vm3, %v2516_v44 }
 0xa5b   : > { %4239 = vmatmul.mubr.msk.f32.gmra.mrb[8].mxu0 %vm1115_vm3, %v4232_v43  ;;  %v3961_v43 = vld [vmem:[%s854_s2] ss:$0 sm:$0xff]  ;;  %s5819_s2 = scalar_lea.vmem [#allocation6], %s5320_s26 }
 0xa5c   : > { %4252 = vmatprep.mubr.msk.f32.mxu0 %vm1115_vm3, %v2718_v41 }
 0xa5f   : > { %4253 = vmatmul.mubr.msk.f32.vlgmr.msra.gmra.mrb[12].mxu0 %vm1115_vm3, %v2720_v45 }
 0xa65   : > { %v4247_v46 = vpop.f32.mrb[20].mxu1 }
 0xa66   : > { %v2809_v47 = vmul.f32 0.35355338, %v4247_v46  ;;  %v2708_v48 = vpop.f32.mrb[21].mxu1 }
 0xa67   : > { %v2808_v49 = vmul.f32 0.35355338, %v2708_v48  ;;  %v4715_v48 = vld [vmem:[#allocation2 + $0x8] sm:$0xff] }
 0xa68   : > { %v2813_v50 = vadd.f32 %v2809_v47, %v5460_v53 }
 0xa69   : > { %v2812_v42 = vadd.f32 %v2808_v49, %v5460_v53 }
 0xa6a   : > { %v2819_v51 = vsel %vm1296_vm6, %v2813_v50, -inf }
 0xa6b   : > { %2820 = vmax.xlane.f32.xlu0 %v2819_v51  ;;  %v2816_v52 = vsel %vm1296_vm6, %v2812_v42, -inf }
 0xa6c   : > { %2817 = vmax.xlane.f32.xlu1 %v2816_v52 }
 0xaf8   : > { %v2821_v54 = vpop.xlane.xlu0 %2820 }
 0xaf9   : > { %v2818_v55 = vpop.xlane.xlu1 %2817  ;;  %v2829_v56 = vsub.f32 %v2813_v50, %v2821_v54 }
 0xafa   : > { %v2828_v57 = vsub.f32 %v2812_v42, %v2818_v55  ;;  %v4716_v42 = vld [vmem:[#allocation2] sm:$0xff] }
 0xafb   : > { %v2834_v58 = vmul.f32 1.442695, %v2829_v56 }
 0xafc   : > { %v2832_v59 = vmul.f32 1.442695, %v2828_v57 }
 0xafd   : > { %4683 = vpow2.f32 %v2834_v58  ;;  %v4717_v58 = vld [vmem:[#allocation2 + $0x18] sm:$0xff] }
 0xafe   : > { %4685 = vpow2.f32 %v2832_v59 }
 0xb07   : > { %v4684_v7 = vpop.eup %4683 }
 0xb08   : > { %v4686_v9 = vpop.eup %4685  ;;  %v2843_v30 = vsel %vm1296_vm6, %v4684_v7, 0.0 }
 0xb09   : > { %v2840_v32 = vsel %vm1296_vm6, %v4686_v9, 0.0 }
 0xb32   : > { %v4254_v60 = vpop.f32.mrb[12].mxu0 }
 0xb33   : > { %v2811_v61 = vmul.f32 0.35355338, %v4254_v60  ;;  %v2799_v62 = vpop.f32.mrb[13].mxu0  ;;  %v4718_v60 = vld [vmem:[#allocation2 + $0x10] sm:$0xff] }
 0xb34   : > { %v2810_v63 = vmul.f32 0.35355338, %v2799_v62 }
 0xb35   : > { %v2815_v4 = vadd.f32 %v2811_v61, %v5460_v53 }
 0xb36   : > { %v2814_v5 = vadd.f32 %v2810_v63, %v5460_v53 }
 0xb37   : > { %v2825_v6 = vsel %vm1296_vm6, %v2815_v4, -inf }
 0xb38   : > { %2826 = vmax.xlane.f32.xlu1 %v2825_v6  ;;  %v2822_v8 = vsel %vm1296_vm6, %v2814_v5, -inf }
 0xb39   : > { %2823 = vmax.xlane.f32.xlu0 %v2822_v8 }
 0xb3c   : > { %2844 = vadd.xlane.f32.xlu1 %v2843_v30 }
 0xb3d   : > { %2841 = vadd.xlane.f32.xlu0 %v2840_v32 }
 0xbc5   : > { %v2827_v37 = vpop.xlane.xlu1 %2826 }
 0xbc6   : > { %v2831_v35 = vsub.f32 %v2815_v4, %v2827_v37  ;;  %v2824_v10 = vpop.xlane.xlu0 %2823 }
 0xbc7   : > { %v2830_v1 = vsub.f32 %v2814_v5, %v2824_v10 }
 0xbc8   : > { %v2838_v11 = vmul.f32 1.442695, %v2831_v35 }
 0xbc9   : > { %v2836_v53 = vmul.f32 1.442695, %v2830_v1  ;;  %v2845_v16 = vpop.xlane.xlu1 %2844 }
 0xbca   : > { %4687 = vpow2.f32 %v2838_v11  ;;  %v2842_v12 = vpop.xlane.xlu0 %2841 }
 0xbcb   : > { %4689 = vpow2.f32 %v2836_v53 }
 0xbcc   : > { %4691 = vrcp.f32 %v2842_v12 }
 0xbcd   : > { %4693 = vrcp.f32 %v2845_v16  ;;  %v3226_v16 = vld [vmem:[%s5374_s1 + $0x8] sm:$0xff] }
 0xbd4   : > { %v4688_v0 = vpop.eup %4687 }
 0xbd5   : > { %v4690_v3 = vpop.eup %4689  ;;  %v2849_v13 = vsel %vm1296_vm6, %v4688_v0, 0.0 }
 0xbd6   : > { %2850 = vadd.xlane.f32.xlu1 %v2849_v13  ;;  %v2846_v14 = vsel %vm1296_vm6, %v4690_v3, 0.0  ;;  %v4692_v2 = vpop.eup %4691 }
 0xbd7   : > { %2847 = vadd.xlane.f32.xlu0 %v2846_v14  ;;  %v2853_v15 = vmul.f32 %v4692_v2, %v4686_v9  ;;  %v4694_v27 = vpop.eup %4693 }
 0xbd8   : > { %v2855_v28 = vmul.f32 %v4694_v27, %v4684_v7  ;;  %v3341_v27 = vld [vmem:[%s5380_s18 + $0x20] sm:$0xff] }
 0xbd9   : > { %4259 = vmatprep.mubr.msk.f32.mxu1 %vm1296_vm6, %v2853_v15  ;;  %v3225_v15 = vld [vmem:[%s5374_s1] sm:$0xff] }
 0xbe7   : > { %4631 = vrot.lane.b32.xlu1 %v5437_v38, %s4980_s24 }
 0xbed   : > { %4626 = vrot.lane.b32.xlu0 %v5428_v34, %s4980_s24 }
 0xc63   : > { %v2851_v17 = vpop.xlane.xlu1 %2850 }
 0xc64   : > { %4695 = vrcp.f32 %v2851_v17  ;;  %v2848_v18 = vpop.xlane.xlu0 %2847  ;;  %v4416_v17 = vpack.c.bf16 %v3226_v16, %v3225_v15 }
 0xc65   : > { %4697 = vrcp.f32 %v2848_v18  ;;  %v3227_v18 = vld [vmem:[%s5374_s1 + $0x10] sm:$0xff] }
 0xc67   : > { %v4632_v19 = vpop.permute.xlu1 %4631 }
 0xc68   : > { %v4634_v20 = vunpack.i.h.bf16 %v4632_v19  ;;  %v4633_v21 = vunpack.i.l.bf16 %v4632_v19  ;;  %v4627_v22 = vpop.permute.xlu0 %4626  ;;  %v3228_v19 = vld [vmem:[%s5374_s1 + $0x18] sm:$0xff]  ;;  %s5818_s1 = scalar_lea.vmem [#allocation4], %s5320_s26 }
 0xc69   : > { %v4629_v23 = vunpack.i.h.bf16 %v4627_v22  ;;  %v4628_v24 = vunpack.i.l.bf16 %v4627_v22  ;;  %v3338_v22 = vld [vmem:[%s5380_s18 + $0x8] sm:$0xff] }
 0xc6a   : > { %v4412_v25 = vpack.c.bf16 %v4634_v20, %v4633_v21  ;;  %v4420_v20 = vpack.c.bf16 %v3228_v19, %v3227_v18  ;;  %v3337_v21 = vld [vmem:[%s5380_s18] sm:$0xff] }
 0xc6b   : > { %v4408_v26 = vpack.c.bf16 %v4629_v23, %v4628_v24  ;;  %v3339_v23 = vld [vmem:[%s5380_s18 + $0x10] sm:$0xff]  ;;  %v4424_v24 = vpack.c.bf16 %v3338_v22, %v3337_v21 }
 0xc6c   : > { %4413 = vmatprep.subr.bf16.mxu0 %v4412_v25 }
 0xc6d   : > { %4409 = vmatprep.subr.bf16.mxu1 %v4408_v26  ;;  %4415 = vmatpush3.bf16.msra.mxu0 %v4412_v25  ;;  %v3340_v25 = vld [vmem:[%s5380_s18 + $0x18] sm:$0xff] }
 0xc6e   : > { %v4696_v34 = vpop.eup %4695  ;;  %4411 = vmatpush3.bf16.msra.mxu1 %v4408_v26  ;;  %4269 = vmatprep.subr.mxu0 %v1108_v33  ;;  %v4428_v26 = vpack.c.bf16 %v3340_v25, %v3339_v23 }
 0xc6f   : > { %v4698_v38 = vpop.eup %4697  ;;  %v2859_v31 = vmul.f32 %v4696_v34, %v4688_v0  ;;  %4417 = vmatprep.subr.bf16.mxu1 %v4416_v17  ;;  %v3342_v34 = vld [vmem:[%s5380_s18 + $0x28] sm:$0xff] }
 0xc70   : > { %v2857_v29 = vmul.f32 %v4698_v38, %v4690_v3  ;;  %v4432_v38 = vpack.c.bf16 %v3342_v34, %v3341_v27 }
 0xc71   : > { %4260 = vmatmul.mubr.msk.f32.vlgmr.msra.gmra.mrb[22].mxu1 %vm1296_vm6, %v2855_v28 }
 0xc72   : > { %4266 = vmatprep.mubr.msk.f32.mxu0 %vm1296_vm6, %v2857_v29  ;;  %4419 = vmatpush3.bf16.msra.mxu1 %v4416_v17 }
 0xc73   : > { %4267 = vmatmul.mubr.msk.f32.vlgmr.msra.gmra.mrb[14].mxu0 %vm1296_vm6, %v2859_v31  ;;  %4421 = vmatprep.subr.bf16.mxu1 %v4420_v20 }
 0xc74   : > { %4270 = vmatpush3.msra.mxu0 %v1108_v33 }
 0xc75   : > { %4425 = vmatprep.subr.bf16.mxu0 %v4424_v24 }
 0xc76   : > { %4423 = vmatpush3.bf16.msra.mxu1 %v4420_v20 }
 0xd44   : > { %v4261_v36 = vpop.f32.mrb[22].mxu1 }
 0xd45   : > { %v2938_v39 = vpop.f32.mrb[23].mxu1 }
 0xd46   : > { %v4268_v40 = vpop.f32.mrb[14].mxu0  ;;  %4271 = vmatprep.mubr.msk.f32.mxu0 %vm1115_vm3, %v2938_v39 }
 0xd47   : > { %v3025_v41 = vpop.f32.mrb[15].mxu0  ;;  %4272 = vmatmul.mubr.msk.f32.vlgmr.msra.gmra.mrb[6].mxu0 %vm1115_vm3, %v4261_v36 }
 0xd48   : > { %4274 = vmatprep.mubr.msk.f32.mxu0 %vm1115_vm3, %v3025_v41  ;;  %4427 = vmatpush3.bf16.msra.mxu0 %v4424_v24 }
 0xd49   : > { %4429 = vmatprep.subr.bf16.mxu0 %v4428_v26 }
 0xd4b   : > { %4275 = vmatmul.mubr.msk.f32.gmra.mrb[8].mxu0 %vm1115_vm3, %v4268_v40 }
 0xd4c   : > { %4431 = vmatpush3.bf16.msra.mxu0 %v4428_v26 }
 0xd4d   : > { %4433 = vmatprep.subr.bf16.mxu0 %v4432_v38 }
 0xd50   : > { %4435 = vmatpush3.bf16.msra.mxu0 %v4432_v38 }
 0xe1a   : > { %v4273_v44 = vpop.f32.mrb[6].mxu0 }
 0xe1b   : > { %v3143_v45 = vadd.f32 %v4273_v44, %v3961_v43  ;;  %v3112_v46 = vpop.f32.mrb[7].mxu0 }
 0xe1c   : > { %v3142_v47 = vadd.f32 %v3961_v43, %v3112_v46 }
 0xe1d   : > { %v3147_v49 = vadd.f32 %v4715_v48, %v3143_v45  ;;  %v3962_v48 = vld [vmem:[%s5818_s1] ss:$0 sm:$0xff] }
 0xe1e   : > { %v4276_v50 = vpop.f32.mrb[8].mxu0  ;;  %v3146_v51 = vadd.f32 %v4716_v42, %v3142_v47 }
 0xe1f   : > { %v3145_v52 = vadd.f32 %v4276_v50, %v3961_v43  ;;  %v3122_v54 = vpop.f32.mrb[9].mxu0  ;;  %v3155_v55 = vsel %vm1003_vm2, %v3147_v49, 0.0 }
 0xe20   : > { %v3144_v56 = vadd.f32 %v3961_v43, %v3122_v54  ;;  %3156 = vadd.xlane.f32.xlu0 %v3155_v55  ;;  %v3152_v57 = vsel %vm1003_vm2, %v3146_v51, 0.0 }
 0xe21   : > { %3153 = vadd.xlane.f32.xlu1 %v3152_v57  ;;  %v3149_v59 = vadd.f32 %v4717_v58, %v3145_v52 }
 0xe22   : > { %v3148_v61 = vadd.f32 %v4718_v60, %v3144_v56 }
 0xe23   : > { %v3161_v62 = vsel %vm1003_vm2, %v3149_v59, 0.0 }
 0xe24   : > { %v3158_v63 = vsel %vm1003_vm2, %v3148_v61, 0.0 }
 0xe25   : > { %3162 = vadd.xlane.f32.xlu1 %v3161_v62  ;;  %3159 = vadd.xlane.f32.xlu0 %v3158_v63 }
 0xead   : > { %v3157_v4 = vpop.xlane.xlu0 %3156 }
 0xeae   : > { %v3166_v5 = vmul.f32 0.03125, %v3157_v4  ;;  %v3154_v6 = vpop.xlane.xlu1 %3153 }
 0xeaf   : > { %v3165_v7 = vmul.f32 0.03125, %v3154_v6  ;;  %v3344_v6 = vld [vmem:[%s5380_s18 + $0x38] sm:$0xff] }
 0xeb0   : > { %v5651_v8 = vsub.f32 %v3147_v49, %v3166_v5  ;;  %v3343_v5 = vld [vmem:[%s5380_s18 + $0x30] sm:$0xff]  ;;  %s5822_s18 = scalar_lea.vmem [#allocation8], %s5320_s26 }
 0xeb1   : > { %v5653_v9 = vsub.f32 %v3146_v51, %v3165_v7  ;;  %v3963_v51 = vld [vmem:[%s5819_s2] ss:$0 sm:$0xff]  ;;  %v4436_v7 = vpack.c.bf16 %v3344_v6, %v3343_v5 }
 0xeb2   : > { %v3163_v30 = vpop.xlane.xlu1 %3162  ;;  %v3160_v32 = vpop.xlane.xlu0 %3159  ;;  %v3174_v37 = vmul.f32 %v5651_v8, %v5651_v8 }
 0xeb3   : > { %v3168_v35 = vmul.f32 0.03125, %v3163_v30  ;;  %v3167_v10 = vmul.f32 0.03125, %v3160_v32  ;;  %v3173_v1 = vmul.f32 %v5653_v9, %v5653_v9  ;;  %4437 = vmatprep.subr.bf16.mxu0 %v4436_v7 }
 0xeb4   : > { %v3180_v11 = vsel %vm1003_vm2, %v3174_v37, 0.0  ;;  %4439 = vmatpush3.bf16.msra.mxu0 %v4436_v7  ;;  %v3974_v7 = vld [vmem:[%s5822_s18] ss:$0 sm:$0xff] }
 0xeb5   : > { %v5660_v53 = vsub.f32 %v3149_v59, %v3168_v35  ;;  %v5662_v12 = vsub.f32 %v3148_v61, %v3167_v10  ;;  %3181 = vadd.xlane.f32.xlu1 %v3180_v11  ;;  %v3177_v0 = vsel %vm1003_vm2, %v3173_v1, 0.0 }
 0xeb6   : > { %3178 = vadd.xlane.f32.xlu0 %v3177_v0 }
 0xeb7   : > { %v3176_v3 = vmul.f32 %v5660_v53, %v5660_v53  ;;  %v3175_v13 = vmul.f32 %v5662_v12, %v5662_v12 }
 0xeb9   : > { %v3186_v14 = vsel %vm1003_vm2, %v3176_v3, 0.0  ;;  %v3183_v2 = vsel %vm1003_vm2, %v3175_v13, 0.0  ;;  %v3969_v13 = vld [vmem:[%s5821_s17] ss:$0 sm:$0xff] }
 0xeba   : > { %3187 = vadd.xlane.f32.xlu1 %v3186_v14  ;;  %3184 = vadd.xlane.f32.xlu0 %v3183_v2 }
 0xf42   : > { %v3182_v28 = vpop.xlane.xlu1 %3181 }
 0xf43   : > { %v3190_v29 = vmul.f32 0.03125, %v3182_v28  ;;  %v3179_v31 = vpop.xlane.xlu0 %3178 }
 0xf44   : > { %v3189_v33 = vmul.f32 0.03125, %v3179_v31 }
 0xf45   : > { %v3194_v36 = vadd.f32 1e-05, %v3190_v29 }
 0xf46   : > { %v3193_v39 = vadd.f32 1e-05, %v3189_v33 }
 0xf47   : > { %4699 = vrsqrt.f32 %v3194_v36  ;;  %v3188_v40 = vpop.xlane.xlu1 %3187  ;;  %v3185_v41 = vpop.xlane.xlu0 %3184 }
 0xf48   : > { %4701 = vrsqrt.f32 %v3193_v39  ;;  %v3192_v43 = vmul.f32 0.03125, %v3188_v40  ;;  %v3191_v44 = vmul.f32 0.03125, %v3185_v41 }
 0xf4a   : > { %v3196_v45 = vadd.f32 1e-05, %v3192_v43  ;;  %v3195_v46 = vadd.f32 1e-05, %v3191_v44 }
 0xf4c   : > { %4703 = vrsqrt.f32 %v3196_v45 }
 0xf4d   : > { %4705 = vrsqrt.f32 %v3195_v46 }
 0xf51   : > { %v4700_v47 = vpop.eup %4699 }
 0xf52   : > { %v4702_v49 = vpop.eup %4701  ;;  %v3202_v50 = vmul.f32 %v4700_v47, %v5651_v8  ;;  %v3964_v8 = vld [vmem:[%s5820_s28] ss:$0 sm:$0xff] }
 0xf53   : > { %v3201_v42 = vmul.f32 %v4702_v49, %v5653_v9 }
 0xf54   : > { %v3212_v52 = vmul.f32 %v3962_v48, %v3202_v50 }
 0xf55   : > { %v3211_v54 = vmul.f32 %v3962_v48, %v3201_v42 }
 0xf56   : > { %v4704_v55 = vpop.eup %4703  ;;  %v3222_v59 = vadd.f32 %v3963_v51, %v3212_v52 }
 0xf57   : > { %v4706_v56 = vpop.eup %4705  ;;  %v3221_v57 = vadd.f32 %v3963_v51, %v3211_v54  ;;  %v3204_v58 = vmul.f32 %v4704_v55, %v5660_v53 }
 0xf58   : > { %v3203_v60 = vmul.f32 %v4706_v56, %v5662_v12 }
 0xf59   : > { %4285 = vmatprep.mubr.msk.f32.mxu1 %vm1003_vm2, %v3221_v57  ;;  %v3214_v61 = vmul.f32 %v3962_v48, %v3204_v58 }
 0xf5a   : > { %4286 = vmatmul.mubr.msk.f32.vlgmr.msra.gmra.mrb[24].mxu1 %vm1003_vm2, %v3222_v59  ;;  %v3213_v62 = vmul.f32 %v3962_v48, %v3203_v60 }
 0xf5b   : > { %v3224_v63 = vadd.f32 %v3963_v51, %v3214_v61 }
 0xf5c   : > { %v3223_v4 = vadd.f32 %v3963_v51, %v3213_v62 }
 0xf5e   : > { %4288 = vmatprep.mubr.msk.f32.mxu1 %vm1003_vm2, %v3223_v4 }
 0xf5f   : > { %4289 = vmatmul.mubr.msk.f32.gmra.mrb[26].mxu1 %vm1003_vm2, %v3224_v63 }
0x102d   : > { %v4287_v9 = vpop.f32.mrb[24].mxu1 }
0x102e   : > { %v3320_v30 = vadd.f32 %v4287_v9, %v3964_v8  ;;  %v3314_v32 = vpop.f32.mrb[25].mxu1 }
0x102f   : > { %v3315_v37 = vadd.f32 %v3964_v8, %v3314_v32 }
0x1030   : > { %v3334_v10 = vmax.f32 %v3320_v30, 0.0  ;;  %v3975_v30 = vld [vmem:[%s5823_s13] ss:$0 sm:$0xff] }
0x1031   : > { %v3333_v35 = vmax.f32 %v3315_v37, 0.0 }
0x1032   : > { %v4290_v1 = vpop.f32.mrb[26].mxu1 }
0x1033   : > { %v3330_v11 = vadd.f32 %v4290_v1, %v3964_v8  ;;  %v3324_v53 = vpop.f32.mrb[27].mxu1  ;;  %4307 = vmatprep.mubr.msk.f32.mxu0 %vm3352_vm7, %v3333_v35 }
0x1034   : > { %v3325_v12 = vadd.f32 %v3964_v8, %v3324_v53  ;;  %4308 = vmatmul.mubr.msk.f32.vlgmr.msra.gmra.mrb[16].mxu0 %vm3352_vm7, %v3334_v10 }
0x1035   : > { %v3336_v3 = vmax.f32 %v3330_v11, 0.0 }
0x1036   : > { %v3335_v0 = vmax.f32 %v3325_v12, 0.0 }
0x1038   : > { %4310 = vmatprep.mubr.msk.f32.mxu0 %vm3352_vm7, %v3335_v0 }
0x1039   : > { %4311 = vmatmul.mubr.msk.f32.gmra.mrb[18].mxu0 %vm3352_vm7, %v3336_v3 }
0x1107   : > { %v4309_v14 = vpop.f32.mrb[16].mxu0 }
0x1108   : > { %v3437_v2 = vadd.f32 %v4309_v14, %v3969_v13  ;;  %v3431_v15 = vpop.f32.mrb[17].mxu0 }
0x1109   : > { %v3432_v16 = vadd.f32 %v3969_v13, %v3431_v15  ;;  %v3536_v15 = vld [vmem:[%s5824_s15] sm:$0xff] (!%p3976_p8) }
0x110a   : > { %v3451_v17 = vadd.f32 %v3437_v2, %v3222_v59 }
0x110b   : > { %v3450_v18 = vadd.f32 %v3432_v16, %v3221_v57  ;;  %v3537_v16 = vld [vmem:[%s5824_s15 + $0x8] sm:$0xff] (!%p3976_p8) }
0x110c   : > { %v4312_v19 = vpop.f32.mrb[18].mxu0  ;;  %v3459_v20 = vsel %vm1003_vm2, %v3451_v17, 0.0 }
0x110d   : > { %v3447_v21 = vadd.f32 %v4312_v19, %v3969_v13  ;;  %v3441_v22 = vpop.f32.mrb[19].mxu0  ;;  %3460 = vadd.xlane.f32.xlu1 %v3459_v20  ;;  %v3456_v23 = vsel %vm1003_vm2, %v3450_v18, 0.0  ;;  %v4441_v19 = vpack.c.bf16 (!%p3976_p8), %v3537_v16, %v3536_v15  ;;  %v3539_v20 = vld [vmem:[%s5824_s15 + $0x18] sm:$0xff] (!%p3976_p8) }
0x110e   : > { %v3442_v24 = vadd.f32 %v3969_v13, %v3441_v22  ;;  %3457 = vadd.xlane.f32.xlu0 %v3456_v23 }
0x110f   : > { %v3453_v25 = vadd.f32 %v3447_v21, %v3224_v63  ;;  %v4983_v21 = vmov (!%p3976_p8), 0.0  }
0x1110   : > { %v3452_v26 = vadd.f32 %v3442_v24, %v3223_v4  ;;  %4321 = vmatprep.mubr.msk.f32.mxu0 (!%p3976_p8), %vm4982_vm8, %v4983_v21 }
0x1111   : > { %v3465_v27 = vsel %vm1003_vm2, %v3453_v25, 0.0 }
0x1112   : > { %3466 = vadd.xlane.f32.xlu1 %v3465_v27  ;;  %v3462_v34 = vsel %vm1003_vm2, %v3452_v26, 0.0 }
0x1113   : > { %3463 = vadd.xlane.f32.xlu0 %v3462_v34 }
0x119a   : > { %v3461_v38 = vpop.xlane.xlu1 %3460 }
0x119b   : > { %v3469_v28 = vmul.f32 0.03125, %v3461_v38  ;;  %v3458_v29 = vpop.xlane.xlu0 %3457 }
0x119c   : > { %v3468_v31 = vmul.f32 0.03125, %v3458_v29 }
0x119d   : > { %v3473_v33 = vsub.f32 %v3451_v17, %v3469_v28  ;;  %v3538_v17 = vld [vmem:[%s5824_s15 + $0x10] sm:$0xff] (!%p3976_p8) }
0x119e   : > { %v3472_v36 = vsub.f32 %v3450_v18, %v3468_v31  ;;  %v4981_v18 = vmov (!%p3976_p8), 0.0|0.0   ;;  %v4444_v22 = vpack.c.bf16 (!%p3976_p8), %v3539_v20, %v3538_v17 }
0x119f   : > { %v3467_v39 = vpop.xlane.xlu1 %3466  ;;  %v3477_v40 = vmul.f32 %v3473_v33, %v3473_v33  ;;  %4440 = vmatprep.subr.bf16.mxu0 (!%p3976_p8), %v4981_v18 }
0x11a0   : > { %v3471_v41 = vmul.f32 0.03125, %v3467_v39  ;;  %v3464_v43 = vpop.xlane.xlu0 %3463  ;;  %v3476_v44 = vmul.f32 %v3472_v36, %v3472_v36  ;;  %4442 = vmatpush3.bf16.msra.mxu0 (!%p3976_p8), %v4441_v19 }
0x11a1   : > { %v3470_v45 = vmul.f32 0.03125, %v3464_v43  ;;  %v3483_v46 = vsel %vm1003_vm2, %v3477_v40, 0.0  ;;  %4443 = vmatprep.subr.bf16.mxu0 (!%p3976_p8), %v4981_v18 }
0x11a2   : > { %v3475_v47 = vsub.f32 %v3453_v25, %v3471_v41  ;;  %3484 = vadd.xlane.f32.xlu1 %v3483_v46  ;;  %v3480_v48 = vsel %vm1003_vm2, %v3476_v44, 0.0  ;;  %v3977_v25 = vld [vmem:[#allocation3] ss:$0 sm:$0xff] (!%p3976_p8) }
0x11a3   : > { %v3474_v49 = vsub.f32 %v3452_v26, %v3470_v45  ;;  %3481 = vadd.xlane.f32.xlu0 %v3480_v48 }
0x11a4   : > { %v3479_v50 = vmul.f32 %v3475_v47, %v3475_v47  ;;  %4445 = vmatpush3.bf16.msra.mxu0 (!%p3976_p8), %v4444_v22 }
0x11a5   : > { %v3478_v42 = vmul.f32 %v3474_v49, %v3474_v49 }
0x11a6   : > { %v3489_v51 = vsel %vm1003_vm2, %v3479_v50, 0.0 }
0x11a7   : > { %3490 = vadd.xlane.f32.xlu1 %v3489_v51  ;;  %v3486_v52 = vsel %vm1003_vm2, %v3478_v42, 0.0 }
0x11a8   : > { %3487 = vadd.xlane.f32.xlu0 %v3486_v52 }
0x122f   : > { %v3485_v54 = vpop.xlane.xlu1 %3484 }
0x1230   : > { %v3493_v55 = vmul.f32 0.03125, %v3485_v54  ;;  %v3482_v56 = vpop.xlane.xlu0 %3481 }
0x1231   : > { %v3492_v57 = vmul.f32 0.03125, %v3482_v56 }
0x1232   : > { %v3497_v58 = vadd.f32 1e-05, %v3493_v55 }
0x1233   : > { %v3496_v59 = vadd.f32 1e-05, %v3492_v57 }
0x1234   : > { %4707 = vrsqrt.f32 %v3497_v58  ;;  %v3491_v60 = vpop.xlane.xlu1 %3490 }
0x1235   : > { %4709 = vrsqrt.f32 %v3496_v59  ;;  %v3495_v61 = vmul.f32 0.03125, %v3491_v60  ;;  %v3488_v62 = vpop.xlane.xlu0 %3487 }
0x1236   : > { %v3494_v63 = vmul.f32 0.03125, %v3488_v62 }
0x1237   : > { %v3499_v4 = vadd.f32 1e-05, %v3495_v61 }
0x1238   : > { %v3498_v5 = vadd.f32 1e-05, %v3494_v63 }
0x1239   : > { %4711 = vrsqrt.f32 %v3499_v4 }
0x123a   : > { %4713 = vrsqrt.f32 %v3498_v5 }
0x123e   : > { %v4708_v6 = vpop.eup %4707 }
0x123f   : > { %v4710_v8 = vpop.eup %4709  ;;  %v3505_v9 = vmul.f32 %v4708_v6, %v3473_v33 }
0x1240   : > { %v3504_v32 = vmul.f32 %v4710_v8, %v3472_v36 }
0x1241   : > { %v3515_v37 = vmul.f32 %v3974_v7, %v3505_v9 }
0x1242   : > { %v3514_v35 = vmul.f32 %v3974_v7, %v3504_v32 }
0x1243   : > { %v4712_v10 = vpop.eup %4711  ;;  %v3525_v1 = vadd.f32 %v3975_v30, %v3515_v37 }
0x1244   : > { %v4714_v11 = vpop.eup %4713  ;;  %v3524_v53 = vadd.f32 %v3975_v30, %v3514_v35  ;;  %v3507_v12 = vmul.f32 %v4712_v10, %v3475_v47 }
0x1245   : > { %3529 = vst.msk [vmem:[#allocation2 + $0x8] sm:$0xff] %vm1003_vm2, %v3525_v1  ;;  %v3506_v0 = vmul.f32 %v4714_v11, %v3474_v49  ;;  %3535 = sbr.rel (%p3976_p8) target bundleno = 4901 (0x1325), region = 120 }
0x1246   : > { %3528 = vst.msk [vmem:[#allocation2] sm:$0xff] %vm1003_vm2, %v3524_v53  ;;  %v3517_v3 = vmul.f32 %v3974_v7, %v3507_v12 }
0x1247   : > { %v3516_v13 = vmul.f32 %v3974_v7, %v3506_v0 }
0x1248   : > { %v3527_v14 = vadd.f32 %v3975_v30, %v3517_v3 }
0x1249   : > { %v3526_v2 = vadd.f32 %v3975_v30, %v3516_v13 }
0x124a   : > { %3531 = vst.msk [vmem:[#allocation2 + $0x18] sm:$0xff] %vm1003_vm2, %v3527_v14 }
0x124b   : > { %3530 = vst.msk [vmem:[#allocation2 + $0x10] sm:$0xff] %vm1003_vm2, %v3526_v2  ;;  %v3549_v23 = vrot.slane (!%p3976_p8), %v3526_v2, 7 }
0x124d   : > { %v3551_v24 = vsel %vm3550_vm9, %v3549_v23, %v3524_v53 }
0x124e   : > { %4322 = vmatmul.mubr.msk.f32.vlgmr.msra.gmra.mrb[0].mxu0 %vm1003_vm2, %v3551_v24 }
0x1321   : > { %v3620_v26 = vpop.f32.mrb[0].mxu0 }
0x1322   : > { %v3621_v27 = vadd.f32 %v3977_v25, %v3620_v26  ;;  %v4323_v34 = vpop.f32.mrb[1].mxu0 }
0x1324   : > { %3625 = vst.msk [vmem:[%s5825_s10] sm:$0x3] %vm3624_vm10, %v3621_v27 }
0x1325 PF: > { %s41_s16 = sadd.s32 1, %s4961_s16   ;;  %s5826_s1 = sld [smem:[#allocation18_spill]] }
0x1326   : > { %p38_p11 = scmp.ge.s32.totalorder %s41_s16, 5   ;;  %s5827_s28 = sld [smem:[#allocation21_spill]] }
0x1327   : > { %s5828_s29 = sld [smem:[#allocation19_spill]]  ;;  %s5829_s0 = sld [smem:[#allocation20_spill]] }
0x1328   : > { %s5830_s26 = smov %s4945_s27  ;;  %40 = sbr.rel (!%p38_p11) target bundleno = 20 (0x14), region = 218 }
0x132b   : > { %s5831_s27 = smov %s5826_s1 }
0x132f   :  { %3645 = vsyncpa [#allocation5], 1 }
0x1330   :  { %3647 = vsyncpa [#allocation5 + $0x1], 1 }
0x1331   :  { %3648 = vsyncpa [#allocation7], 1 }
0x1332   :  { %3650 = vsyncpa [#allocation7 + $0x1], 1 }
0x1333   :  { %3651 = vsyncpa [#allocation10], 1 }
0x1334   :  { %3653 = vsyncpa [#allocation10 + $0x1], 1 }
0x1335   :  { %3654 = vsyncpa [#allocation13], 1 }
0x1336   :  { %3656 = vsyncpa [#allocation13 + $0x1], 1 }

</bundles_post_ra>
